<compile_context>
chip_gen: v7x
topology: tpu7x:2x2x1
jax: 0.10.0
libtpu: 0.0.40
codegen_flags: <defaults>
</compile_context>

<pallas_src>
import functools
import math

import jax
import jax.numpy as jnp
from jax.experimental import pallas as pl
from jax.experimental.pallas import tpu as pltpu


# ----------------------------------------------------------------------------
# Fused whole-model kernel (grid axis = transformer depth)
# ----------------------------------------------------------------------------

def _fused_kernel(patches_ref, pw_ref, pb_ref, pos_ref,
                  n1g_ref, n1b_ref, wqkv_ref, wo_ref,
                  n2g_ref, n2b_ref, w1_ref, b1_ref, w2_ref, b2_ref,
                  nfg_ref, nfb_ref, dw_ref, db_ref, seg_ref, segT_ref,
                  o_ref, tok_ref,
                  *, B, N, E, heads, eps, scale):
    d = pl.program_id(0)

    def ln(x, g, b):  # single-pass f32 LayerNorm over last dim (E[x], E[x^2])
        mu = jnp.mean(x, axis=-1, keepdims=True)
        msq = jnp.mean(x * x, axis=-1, keepdims=True)
        var = msq - mu * mu
        return (x - mu) * jax.lax.rsqrt(var + eps) * g + b

    def mm(a, w):  # bf16 MXU matmul with f32 accumulation
        return jnp.dot(a.astype(w.dtype), w, preferred_element_type=jnp.float32)

    def tile_b(a):  # stack B copies along the row (sublane) axis
        return jnp.concatenate([a] * B, axis=0)

    # ---- patch embedding (conv-as-matmul) + positional embedding: first step only ----
    @pl.when(d == 0)
    def _():
        emb = mm(patches_ref[...], pw_ref[...]) + pb_ref[...]        # (M, E)
        tok_ref[...] = emb + tile_b(pos_ref[...])                    # pos broadcast to batch

    # ---- transformer encoder block d ------------------------------------------------
    tok = tok_ref[...]                                   # (B*N, E) f32, resident in VMEM
    h = ln(tok, n1g_ref[0], n1b_ref[0])
    qkv = mm(h, wqkv_ref[0])                             # single fused QKV matmul (M, 3E)
    q = qkv[:, :E] * scale
    k = qkv[:, E:2 * E]
    v = qkv[:, 2 * E:]
    seg = seg_ref[...]                                   # (E, heads) bf16 head-selector
    segT = segT_ref[...]                                 # (heads, E) bf16 head-broadcaster

    # Attention over the *image-batch* axis (PyTorch batch_first=False quirk):
    # sequence length == B, attention batch == n_patches * heads.
    attn_rows = []
    for b in range(B):
        qb = q[b * N:(b + 1) * N, :]                     # (N, E) queries for image b
        # all key-batch logits in ONE selector matmul: row bp*N+n = s[b, n, h, bp]
        logits = mm(tile_b(qb) * k, seg)                 # (M, heads) f32
        # exact softmax over the key-batch axis (groups of N rows)
        m = logits[0:N, :]
        for bp in range(1, B):
            m = jnp.maximum(m, logits[bp * N:(bp + 1) * N, :])
        e = jnp.exp(logits - tile_b(m))                  # (M, heads)
        den = e[0:N, :]
        for bp in range(1, B):
            den = den + e[bp * N:(bp + 1) * N, :]
        p = e * tile_b(1.0 / den)                        # exact divide
        # broadcast per-head prob to the E lanes of its head, weight values, reduce over bp
        wv = mm(p, segT) * v                             # (M, E)
        ob = wv[0:N, :]
        for bp in range(1, B):
            ob = ob + wv[bp * N:(bp + 1) * N, :]
        attn_rows.append(ob)                             # (N, E) output for image b

    attn = jnp.concatenate(attn_rows, axis=0)            # (M, E)
    tok = tok + mm(attn, wo_ref[0])                      # one out-proj matmul for the slab

    # ---- MLP (LN2 -> w1 -> GELU -> w2 -> residual) -----------------------------------
    h2 = ln(tok, n2g_ref[0], n2b_ref[0])
    hid = mm(h2, w1_ref[0]) + b1_ref[0]
    hid = jax.nn.gelu(hid, approximate=True)             # tanh-approx GELU (EUP slot)
    tok = tok + mm(hid, w2_ref[0]) + b2_ref[0]

    tok_ref[...] = tok                                   # single slab write per block

    # ---- final LayerNorm + 1x1-conv decoder + tanh: last step only -------------------
    @pl.when(d == pl.num_programs(0) - 1)
    def _():
        t = ln(tok, nfg_ref[...], nfb_ref[...])
        # lane-dense output: decoder weight is zero-padded to CPAD=128 lanes
        o_ref[...] = jnp.tanh(mm(t, dw_ref[...]) + db_ref[...])


def _fused_forward(patches, kp, *, B, N, E, C, heads, depth):
    M = B * N
    hidden = kp["w1"].shape[-1]
    CP2 = patches.shape[1]
    CPAD = kp["dec_w"].shape[1]

    const2 = lambda d: (0, 0)
    perblk = lambda d: (d, 0, 0)

    kernel = functools.partial(_fused_kernel, B=B, N=N, E=E, heads=heads,
                               eps=1e-5, scale=1.0 / math.sqrt(E // heads))

    return pl.pallas_call(
        kernel,
        out_shape=jax.ShapeDtypeStruct((M, CPAD), jnp.float32),
        grid=(depth,),
        in_specs=[
            pl.BlockSpec((M, CP2), const2),          # patches slab (step 0 only)
            pl.BlockSpec((CP2, E), const2),          # patch-embed weight (bf16, pre-transposed)
            pl.BlockSpec((1, E), const2),            # patch-embed bias
            pl.BlockSpec((N, E), const2),            # positional embedding (N, E)
            pl.BlockSpec((1, 1, E), perblk),         # norm1 gamma (stacked over depth)
            pl.BlockSpec((1, 1, E), perblk),         # norm1 beta
            pl.BlockSpec((1, E, 3 * E), perblk),     # fused W_qkv (bf16, pre-transposed)
            pl.BlockSpec((1, E, E), perblk),         # W_out
            pl.BlockSpec((1, 1, E), perblk),         # norm2 gamma
            pl.BlockSpec((1, 1, E), perblk),         # norm2 beta
            pl.BlockSpec((1, E, hidden), perblk),    # mlp W1 (bf16, pre-transposed)
            pl.BlockSpec((1, 1, hidden), perblk),    # mlp b1
            pl.BlockSpec((1, hidden, E), perblk),    # mlp W2 (bf16, pre-transposed)
            pl.BlockSpec((1, 1, E), perblk),         # mlp b2
            pl.BlockSpec((1, E), const2),            # final norm gamma
            pl.BlockSpec((1, E), const2),            # final norm beta
            pl.BlockSpec((E, CPAD), const2),         # decoder 1x1-conv weight (bf16, lane-padded)
            pl.BlockSpec((1, CPAD), const2),         # decoder bias (lane-padded)
            pl.BlockSpec((E, heads), const2),        # per-head segment selector (bf16)
            pl.BlockSpec((heads, E), const2),        # per-head segment broadcaster (bf16)
        ],
        out_specs=pl.BlockSpec((M, CPAD), const2),
        scratch_shapes=[pltpu.VMEM((M, E), jnp.float32)],   # resident token slab
        compiler_params=pltpu.CompilerParams(
            dimension_semantics=("arbitrary",),
            vmem_limit_bytes=48 * 1024 * 1024),
    )(patches, kp["patch_w"], kp["patch_b"], kp["pos"],
      kp["n1_g"], kp["n1_b"], kp["w_qkv"], kp["w_out"],
      kp["n2_g"], kp["n2_b"], kp["w1"], kp["b1"], kp["w2"], kp["b2"],
      kp["nf_g"], kp["nf_b"], kp["dec_w"], kp["dec_b"], kp["seg"], kp["segT"])


# ----------------------------------------------------------------------------
# Parameter init (PyTorch-layout shapes) + one-time packing into kernel layout
# ----------------------------------------------------------------------------

def init_params(key, *, img_size, patch_size, in_chans, embed_dim, depth,
                num_heads, mlp_ratio):
    n_patches = (img_size // patch_size) ** 2
    hidden = int(embed_dim * mlp_ratio)
    keys = jax.random.split(key, 4 + depth)

    def w(k, shape):
        return jax.random.normal(k, shape, jnp.float32) * 0.02

    params = {
        "patch_w": w(keys[0], (embed_dim, in_chans, patch_size, patch_size)),
        "patch_b": w(keys[1], (embed_dim,)),
        "pos_embed": jnp.zeros((1, n_patches, embed_dim), jnp.float32),  # zeros, as in __init__
        "norm_g": jnp.ones((embed_dim,), jnp.float32),
        "norm_b": jnp.zeros((embed_dim,), jnp.float32),
        "dec_w": w(keys[2], (in_chans, embed_dim, 1, 1)),
        "dec_b": w(keys[3], (in_chans,)),
        "blocks": [],
    }
    for d in range(depth):
        bk = jax.random.split(keys[4 + d], 6)
        params["blocks"].append({
            "n1_g": jnp.ones((embed_dim,), jnp.float32),
            "n1_b": jnp.zeros((embed_dim,), jnp.float32),
            "in_proj_w": w(bk[0], (3 * embed_dim, embed_dim)),   # qkv_bias=False -> no biases
            "out_proj_w": w(bk[1], (embed_dim, embed_dim)),
            "n2_g": jnp.ones((embed_dim,), jnp.float32),
            "n2_b": jnp.zeros((embed_dim,), jnp.float32),
            "mlp_w1": w(bk[2], (hidden, embed_dim)),
            "mlp_b1": w(bk[3], (hidden,)),
            "mlp_w2": w(bk[4], (embed_dim, hidden)),
            "mlp_b2": w(bk[5], (embed_dim,)),
        })
    return params


def pack_params(p, num_heads, lane_pad=128):
    """One-time: stack per-block weights over depth, fuse QKV, pre-transpose, bf16-cast
    MXU weights, and lane-pad the decoder output to a dense 128-lane store."""
    E, C, P, _ = p["patch_w"].shape
    hd = E // num_heads
    bf = jnp.bfloat16
    blocks = p["blocks"]

    n_patches = p["pos_embed"].shape[1]
    # decoder view trick (transpose(1,2).view(B,-1,P,P)) requires n_patches == P**2
    assert n_patches == P * P, "pack_params: n_patches must equal patch_size**2"

    def stack_vec(name):
        return jnp.stack([b[name].reshape(1, -1) for b in blocks])      # (depth, 1, dim)

    seg = (jnp.arange(E)[:, None] // hd ==
           jnp.arange(num_heads)[None, :]).astype(bf)                    # (E, heads) exact 0/1

    cpad = max(lane_pad, C)
    dec_w = p["dec_w"].reshape(C, E).T                                    # (E, C)
    dec_w = jnp.pad(dec_w, ((0, 0), (0, cpad - C)))                       # (E, CPAD)
    dec_b = jnp.pad(p["dec_b"].reshape(1, C), ((0, 0), (0, cpad - C)))    # (1, CPAD)

    return {
        "patch_w": p["patch_w"].reshape(E, C * P * P).T.astype(bf),      # (C*P*P, E)
        "patch_b": p["patch_b"].reshape(1, E),
        "pos": p["pos_embed"].reshape(-1, E),                            # (N, E)
        "n1_g": stack_vec("n1_g"), "n1_b": stack_vec("n1_b"),
        "n2_g": stack_vec("n2_g"), "n2_b": stack_vec("n2_b"),
        "w_qkv": jnp.stack([b["in_proj_w"].T for b in blocks]).astype(bf),  # (depth, E, 3E)
        "w_out": jnp.stack([b["out_proj_w"].T for b in blocks]).astype(bf),
        "w1": jnp.stack([b["mlp_w1"].T for b in blocks]).astype(bf),     # (depth, E, hidden)
        "b1": stack_vec("mlp_b1"),
        "w2": jnp.stack([b["mlp_w2"].T for b in blocks]).astype(bf),     # (depth, hidden, E)
        "b2": stack_vec("mlp_b2"),
        "nf_g": p["norm_g"].reshape(1, E),
        "nf_b": p["norm_b"].reshape(1, E),
        "dec_w": dec_w.astype(bf),                                       # (E, CPAD)
        "dec_b": dec_b,
        "seg": seg,
        "segT": seg.T,
    }


# ----------------------------------------------------------------------------
# Forward pass (only patch extraction / final NCHW re-layout are XLA glue)
# ----------------------------------------------------------------------------

def denoising_transformer_forward(x, kp, *, patch_size, num_heads):
    B, C, H, W = x.shape
    P = patch_size
    nH, nW = H // P, W // P
    N = nH * nW
    E = kp["patch_w"].shape[1]
    depth = kp["w_qkv"].shape[0]
    # Final .transpose(1,2).view(B, -1, P, P) feeding a Conv2d(E, C, 1) requires n_patches == P**2.
    assert N == P * P
    assert kp["seg"].shape[1] == num_heads

    # Conv2d(k=P, stride=P) patch extraction as a token-major slab (XLA glue, tiny).
    patches = x.reshape(B, C, nH, P, nW, P).transpose(0, 2, 4, 1, 3, 5).reshape(B * N, C * P * P)

    dec = _fused_forward(patches, kp, B=B, N=N, E=E, C=C,
                         heads=num_heads, depth=depth)                   # (B*N, CPAD)
    dec = dec[:, :C]                                                     # strip lane padding
    # transpose(1,2).view(B, E, P, P): spatial (i, j) <-> token index n = i*P + j
    return dec.reshape(B, P, P, C).transpose(0, 3, 1, 2)                 # NCHW (B, C, P, P)


# ----------------------------------------------------------------------------

if __name__ == "__main__":
    IMG, PATCH, CHANS, EMBED, DEPTH, HEADS = 16, 4, 3, 32, 2, 4  # n_patches = 16 = PATCH**2
    key = jax.random.PRNGKey(0)
    k_x, k_p = jax.random.split(key)

    params = init_params(k_p, img_size=IMG, patch_size=PATCH, in_chans=CHANS,
                         embed_dim=EMBED, depth=DEPTH, num_heads=HEADS, mlp_ratio=4.0)
    kp = pack_params(params, HEADS)   # one-time stack / fuse-QKV / pre-transpose / bf16 cast

    x = jax.random.normal(k_x, (2, CHANS, IMG, IMG), jnp.float32)

    fwd = jax.jit(functools.partial(denoising_transformer_forward,
                                    patch_size=PATCH, num_heads=HEADS))
    out = fwd(x, kp)
    jax.block_until_ready(out)
    assert out.shape == (2, CHANS, PATCH, PATCH), out.shape
    assert bool(jnp.all(jnp.isfinite(out)))
    print("KERNEL_OK")
</pallas_src>

<mosaic_0001>
module attributes {stable_mosaic.version = 11 : i64} {
  func.func @_fused_kernel(%arg0: i32, %arg1: memref<32x48xf32, #tpu.memory_space<vmem>>, %arg2: memref<48x32xbf16, #tpu.memory_space<vmem>>, %arg3: memref<1x32xf32, #tpu.memory_space<vmem>>, %arg4: memref<16x32xf32, #tpu.memory_space<vmem>>, %arg5: memref<1x1x32xf32, #tpu.memory_space<vmem>>, %arg6: memref<1x1x32xf32, #tpu.memory_space<vmem>>, %arg7: memref<1x32x96xbf16, #tpu.memory_space<vmem>>, %arg8: memref<1x32x32xbf16, #tpu.memory_space<vmem>>, %arg9: memref<1x1x32xf32, #tpu.memory_space<vmem>>, %arg10: memref<1x1x32xf32, #tpu.memory_space<vmem>>, %arg11: memref<1x32x128xbf16, #tpu.memory_space<vmem>>, %arg12: memref<1x1x128xf32, #tpu.memory_space<vmem>>, %arg13: memref<1x128x32xbf16, #tpu.memory_space<vmem>>, %arg14: memref<1x1x32xf32, #tpu.memory_space<vmem>>, %arg15: memref<1x32xf32, #tpu.memory_space<vmem>>, %arg16: memref<1x32xf32, #tpu.memory_space<vmem>>, %arg17: memref<32x128xbf16, #tpu.memory_space<vmem>>, %arg18: memref<1x128xf32, #tpu.memory_space<vmem>>, %arg19: memref<32x4xbf16, #tpu.memory_space<vmem>>, %arg20: memref<4x32xbf16, #tpu.memory_space<vmem>>, %arg21: memref<32x128xf32, #tpu.memory_space<vmem>>, %arg22: memref<32x32xf32, #tpu.memory_space<vmem>>) attributes {dimension_semantics = [#tpu.dimension_semantics<arbitrary>], iteration_bounds = array<i64: 2>, scalar_prefetch = 0 : i64, scratch_operands = 1 : i64, tpu.core_type = #tpu.core_type<tc>, window_params = [{pipeline_mode = #tpu.pipeline_mode<synchronous>, transform_indices = @transform_0, window_bounds = array<i64: 32, 48>}, {pipeline_mode = #tpu.pipeline_mode<synchronous>, transform_indices = @transform_1, window_bounds = array<i64: 48, 32>}, {pipeline_mode = #tpu.pipeline_mode<synchronous>, transform_indices = @transform_2, window_bounds = array<i64: 1, 32>}, {pipeline_mode = #tpu.pipeline_mode<synchronous>, transform_indices = @transform_3, window_bounds = array<i64: 16, 32>}, {transform_indices = @transform_4, window_bounds = array<i64: 1, 1, 32>}, {transform_indices = @transform_5, window_bounds = array<i64: 1, 1, 32>}, {transform_indices = @transform_6, window_bounds = array<i64: 1, 32, 96>}, {transform_indices = @transform_7, window_bounds = array<i64: 1, 32, 32>}, {transform_indices = @transform_8, window_bounds = array<i64: 1, 1, 32>}, {transform_indices = @transform_9, window_bounds = array<i64: 1, 1, 32>}, {transform_indices = @transform_10, window_bounds = array<i64: 1, 32, 128>}, {transform_indices = @transform_11, window_bounds = array<i64: 1, 1, 128>}, {transform_indices = @transform_12, window_bounds = array<i64: 1, 128, 32>}, {transform_indices = @transform_13, window_bounds = array<i64: 1, 1, 32>}, {pipeline_mode = #tpu.pipeline_mode<synchronous>, transform_indices = @transform_14, window_bounds = array<i64: 1, 32>}, {pipeline_mode = #tpu.pipeline_mode<synchronous>, transform_indices = @transform_15, window_bounds = array<i64: 1, 32>}, {pipeline_mode = #tpu.pipeline_mode<synchronous>, transform_indices = @transform_16, window_bounds = array<i64: 32, 128>}, {pipeline_mode = #tpu.pipeline_mode<synchronous>, transform_indices = @transform_17, window_bounds = array<i64: 1, 128>}, {pipeline_mode = #tpu.pipeline_mode<synchronous>, transform_indices = @transform_18, window_bounds = array<i64: 32, 4>}, {pipeline_mode = #tpu.pipeline_mode<synchronous>, transform_indices = @transform_19, window_bounds = array<i64: 4, 32>}, {pipeline_mode = #tpu.pipeline_mode<synchronous>, transform_indices = @transform_20, window_bounds = array<i64: 32, 128>}]} {
    %c0_i32 = arith.constant 0 : i32
    %0 = arith.cmpi eq, %arg0, %c0_i32 : i32
    %1 = arith.extui %0 : i1 to i32
    %c0_i32_0 = arith.constant 0 : i32
    %2 = arith.cmpi ne, %1, %c0_i32_0 : i32
    scf.if %2 {
      %c0_63 = arith.constant 0 : index
      %c0_64 = arith.constant 0 : index
      %155 = vector.load %arg1[%c0_63, %c0_64] : memref<32x48xf32, #tpu.memory_space<vmem>>, vector<32x48xf32>
      %c0_65 = arith.constant 0 : index
      %c0_66 = arith.constant 0 : index
      %156 = vector.load %arg2[%c0_65, %c0_66] : memref<48x32xbf16, #tpu.memory_space<vmem>>, vector<48x32xbf16>
      %157 = arith.truncf %155 : vector<32x48xf32> to vector<32x48xbf16>
      %cst_67 = arith.constant dense<0.000000e+00> : vector<32x32xf32>
      %158 = tpu.matmul %157, %156, %cst_67 {dimension_numbers = #tpu.dot_dimension_numbers<[1], [0], [0], [1], [0, 0, 1, 1], [], []>} : vector<32x48xbf16>, vector<48x32xbf16>, vector<32x32xf32> -> vector<32x32xf32>
      %c0_68 = arith.constant 0 : index
      %c0_69 = arith.constant 0 : index
      %159 = vector.load %arg3[%c0_68, %c0_69] : memref<1x32xf32, #tpu.memory_space<vmem>>, vector<1x32xf32>
      %160 = vector.broadcast %159 : vector<1x32xf32> to vector<32x32xf32>
      %161 = arith.addf %158, %160 : vector<32x32xf32>
      %c0_70 = arith.constant 0 : index
      %c0_71 = arith.constant 0 : index
      %162 = vector.load %arg4[%c0_70, %c0_71] : memref<16x32xf32, #tpu.memory_space<vmem>>, vector<16x32xf32>
      %163 = tpu.concatenate %162, %162 in 0 : vector<16x32xf32>, vector<16x32xf32> -> vector<32x32xf32>
      %164 = arith.addf %161, %163 : vector<32x32xf32>
      %c0_72 = arith.constant 0 : index
      %c0_73 = arith.constant 0 : index
      %165 = vector.load %arg22[%c0_72, %c0_73] : memref<32x32xf32, #tpu.memory_space<vmem>>, vector<32x32xf32>
      tpu.vector_store %arg22[%c0_72, %c0_73], %164 {strides = array<i32>} : memref<32x32xf32, #tpu.memory_space<vmem>>, vector<32x32xf32>,
    } else {
    }
    %c0 = arith.constant 0 : index
    %c0_1 = arith.constant 0 : index
    %3 = vector.load %arg22[%c0, %c0_1] : memref<32x32xf32, #tpu.memory_space<vmem>>, vector<32x32xf32>
    %c0_2 = arith.constant 0 : index
    %c0_3 = arith.constant 0 : index
    %c0_4 = arith.constant 0 : index
    %4 = vector.load %arg5[%c0_2, %c0_3, %c0_4] : memref<1x1x32xf32, #tpu.memory_space<vmem>>, vector<1x1x32xf32>
    %5 = vector.shape_cast %4 : vector<1x1x32xf32> to vector<1x32xf32>
    %c0_5 = arith.constant 0 : index
    %c0_6 = arith.constant 0 : index
    %c0_7 = arith.constant 0 : index
    %6 = vector.load %arg6[%c0_5, %c0_6, %c0_7] : memref<1x1x32xf32, #tpu.memory_space<vmem>>, vector<1x1x32xf32>
    %7 = vector.shape_cast %6 : vector<1x1x32xf32> to vector<1x32xf32>
    %cst = arith.constant dense<0.000000e+00> : vector<32xf32>
    %8 = vector.multi_reduction <add>, %3, %cst [1] : vector<32x32xf32> to vector<32xf32>
    %9 = vector.shape_cast %8 : vector<32xf32> to vector<32x1xf32>
    %cst_8 = arith.constant 3.200000e+01 : f32
    %10 = vector.broadcast %cst_8 : f32 to vector<32x1xf32>
    %11 = arith.divf %9, %10 : vector<32x1xf32>
    %12 = arith.mulf %3, %3 : vector<32x32xf32>
    %cst_9 = arith.constant dense<0.000000e+00> : vector<32xf32>
    %13 = vector.multi_reduction <add>, %12, %cst_9 [1] : vector<32x32xf32> to vector<32xf32>
    %14 = vector.shape_cast %13 : vector<32xf32> to vector<32x1xf32>
    %cst_10 = arith.constant 3.200000e+01 : f32
    %15 = vector.broadcast %cst_10 : f32 to vector<32x1xf32>
    %16 = arith.divf %14, %15 : vector<32x1xf32>
    %17 = arith.mulf %11, %11 : vector<32x1xf32>
    %18 = arith.subf %16, %17 : vector<32x1xf32>
    %19 = vector.broadcast %11 : vector<32x1xf32> to vector<32x32xf32>
    %20 = arith.subf %3, %19 : vector<32x32xf32>
    %cst_11 = arith.constant 9.99999974E-6 : f32
    %21 = vector.broadcast %cst_11 : f32 to vector<32x1xf32>
    %22 = arith.addf %18, %21 : vector<32x1xf32>
    %23 = math.rsqrt %22 : vector<32x1xf32>
    %24 = vector.broadcast %23 : vector<32x1xf32> to vector<32x32xf32>
    %25 = arith.mulf %20, %24 : vector<32x32xf32>
    %26 = vector.broadcast %5 : vector<1x32xf32> to vector<32x32xf32>
    %27 = arith.mulf %25, %26 : vector<32x32xf32>
    %28 = vector.broadcast %7 : vector<1x32xf32> to vector<32x32xf32>
    %29 = arith.addf %27, %28 : vector<32x32xf32>
    %c0_12 = arith.constant 0 : index
    %c0_13 = arith.constant 0 : index
    %c0_14 = arith.constant 0 : index
    %30 = vector.load %arg7[%c0_12, %c0_13, %c0_14] : memref<1x32x96xbf16, #tpu.memory_space<vmem>>, vector<1x32x96xbf16>
    %31 = vector.shape_cast %30 : vector<1x32x96xbf16> to vector<32x96xbf16>
    %32 = arith.truncf %29 : vector<32x32xf32> to vector<32x32xbf16>
    %cst_15 = arith.constant dense<0.000000e+00> : vector<32x96xf32>
    %33 = tpu.matmul %32, %31, %cst_15 {dimension_numbers = #tpu.dot_dimension_numbers<[1], [0], [0], [1], [0, 0, 1, 1], [], []>} : vector<32x32xbf16>, vector<32x96xbf16>, vector<32x96xf32> -> vector<32x96xf32>
    %34 = vector.extract_strided_slice %33 {offsets = [0, 0], sizes = [32, 32], strides = [1, 1]} : vector<32x96xf32> to vector<32x32xf32>
    %cst_16 = arith.constant 0.353553385 : f32
    %35 = vector.broadcast %cst_16 : f32 to vector<32x32xf32>
    %36 = arith.mulf %34, %35 : vector<32x32xf32>
    %37 = vector.extract_strided_slice %33 {offsets = [0, 32], sizes = [32, 32], strides = [1, 1]} : vector<32x96xf32> to vector<32x32xf32>
    %38 = vector.extract_strided_slice %33 {offsets = [0, 64], sizes = [32, 32], strides = [1, 1]} : vector<32x96xf32> to vector<32x32xf32>
    %c0_17 = arith.constant 0 : index
    %c0_18 = arith.constant 0 : index
    %39 = vector.load %arg19[%c0_17, %c0_18] : memref<32x4xbf16, #tpu.memory_space<vmem>>, vector<32x4xbf16>
    %c0_19 = arith.constant 0 : index
    %c0_20 = arith.constant 0 : index
    %40 = vector.load %arg20[%c0_19, %c0_20] : memref<4x32xbf16, #tpu.memory_space<vmem>>, vector<4x32xbf16>
    %41 = vector.extract_strided_slice %36 {offsets = [0, 0], sizes = [16, 32], strides = [1, 1]} : vector<32x32xf32> to vector<16x32xf32>
    %42 = tpu.concatenate %41, %41 in 0 : vector<16x32xf32>, vector<16x32xf32> -> vector<32x32xf32>
    %43 = arith.mulf %42, %37 : vector<32x32xf32>
    %44 = arith.truncf %43 : vector<32x32xf32> to vector<32x32xbf16>
    %cst_21 = arith.constant dense<0.000000e+00> : vector<32x4xf32>
    %45 = tpu.matmul %44, %39, %cst_21 {dimension_numbers = #tpu.dot_dimension_numbers<[1], [0], [0], [1], [0, 0, 1, 1], [], []>} : vector<32x32xbf16>, vector<32x4xbf16>, vector<32x4xf32> -> vector<32x4xf32>
    %46 = vector.extract_strided_slice %45 {offsets = [0, 0], sizes = [16, 4], strides = [1, 1]} : vector<32x4xf32> to vector<16x4xf32>
    %47 = vector.extract_strided_slice %45 {offsets = [16, 0], sizes = [16, 4], strides = [1, 1]} : vector<32x4xf32> to vector<16x4xf32>
    %48 = arith.maximumf %46, %47 : vector<16x4xf32>
    %49 = tpu.concatenate %48, %48 in 0 : vector<16x4xf32>, vector<16x4xf32> -> vector<32x4xf32>
    %50 = arith.subf %45, %49 : vector<32x4xf32>
    %51 = math.exp %50 : vector<32x4xf32>
    %52 = vector.extract_strided_slice %51 {offsets = [0, 0], sizes = [16, 4], strides = [1, 1]} : vector<32x4xf32> to vector<16x4xf32>
    %53 = vector.extract_strided_slice %51 {offsets = [16, 0], sizes = [16, 4], strides = [1, 1]} : vector<32x4xf32> to vector<16x4xf32>
    %54 = arith.addf %52, %53 : vector<16x4xf32>
    %cst_22 = arith.constant 1.000000e+00 : f32
    %55 = vector.broadcast %cst_22 : f32 to vector<16x4xf32>
    %56 = arith.divf %55, %54 : vector<16x4xf32>
    %57 = tpu.concatenate %56, %56 in 0 : vector<16x4xf32>, vector<16x4xf32> -> vector<32x4xf32>
    %58 = arith.mulf %51, %57 : vector<32x4xf32>
    %59 = arith.truncf %58 : vector<32x4xf32> to vector<32x4xbf16>
    %cst_23 = arith.constant dense<0.000000e+00> : vector<32x32xf32>
    %60 = tpu.matmul %59, %40, %cst_23 {dimension_numbers = #tpu.dot_dimension_numbers<[1], [0], [0], [1], [0, 0, 1, 1], [], []>} : vector<32x4xbf16>, vector<4x32xbf16>, vector<32x32xf32> -> vector<32x32xf32>
    %61 = arith.mulf %60, %38 : vector<32x32xf32>
    %62 = vector.extract_strided_slice %61 {offsets = [0, 0], sizes = [16, 32], strides = [1, 1]} : vector<32x32xf32> to vector<16x32xf32>
    %63 = vector.extract_strided_slice %61 {offsets = [16, 0], sizes = [16, 32], strides = [1, 1]} : vector<32x32xf32> to vector<16x32xf32>
    %64 = arith.addf %62, %63 : vector<16x32xf32>
    %65 = vector.extract_strided_slice %36 {offsets = [16, 0], sizes = [16, 32], strides = [1, 1]} : vector<32x32xf32> to vector<16x32xf32>
    %66 = tpu.concatenate %65, %65 in 0 : vector<16x32xf32>, vector<16x32xf32> -> vector<32x32xf32>
    %67 = arith.mulf %66, %37 : vector<32x32xf32>
    %68 = arith.truncf %67 : vector<32x32xf32> to vector<32x32xbf16>
    %cst_24 = arith.constant dense<0.000000e+00> : vector<32x4xf32>
    %69 = tpu.matmul %68, %39, %cst_24 {dimension_numbers = #tpu.dot_dimension_numbers<[1], [0], [0], [1], [0, 0, 1, 1], [], []>} : vector<32x32xbf16>, vector<32x4xbf16>, vector<32x4xf32> -> vector<32x4xf32>
    %70 = vector.extract_strided_slice %69 {offsets = [0, 0], sizes = [16, 4], strides = [1, 1]} : vector<32x4xf32> to vector<16x4xf32>
    %71 = vector.extract_strided_slice %69 {offsets = [16, 0], sizes = [16, 4], strides = [1, 1]} : vector<32x4xf32> to vector<16x4xf32>
    %72 = arith.maximumf %70, %71 : vector<16x4xf32>
    %73 = tpu.concatenate %72, %72 in 0 : vector<16x4xf32>, vector<16x4xf32> -> vector<32x4xf32>
    %74 = arith.subf %69, %73 : vector<32x4xf32>
    %75 = math.exp %74 : vector<32x4xf32>
    %76 = vector.extract_strided_slice %75 {offsets = [0, 0], sizes = [16, 4], strides = [1, 1]} : vector<32x4xf32> to vector<16x4xf32>
    %77 = vector.extract_strided_slice %75 {offsets = [16, 0], sizes = [16, 4], strides = [1, 1]} : vector<32x4xf32> to vector<16x4xf32>
    %78 = arith.addf %76, %77 : vector<16x4xf32>
    %cst_25 = arith.constant 1.000000e+00 : f32
    %79 = vector.broadcast %cst_25 : f32 to vector<16x4xf32>
    %80 = arith.divf %79, %78 : vector<16x4xf32>
    %81 = tpu.concatenate %80, %80 in 0 : vector<16x4xf32>, vector<16x4xf32> -> vector<32x4xf32>
    %82 = arith.mulf %75, %81 : vector<32x4xf32>
    %83 = arith.truncf %82 : vector<32x4xf32> to vector<32x4xbf16>
    %cst_26 = arith.constant dense<0.000000e+00> : vector<32x32xf32>
    %84 = tpu.matmul %83, %40, %cst_26 {dimension_numbers = #tpu.dot_dimension_numbers<[1], [0], [0], [1], [0, 0, 1, 1], [], []>} : vector<32x4xbf16>, vector<4x32xbf16>, vector<32x32xf32> -> vector<32x32xf32>
    %85 = arith.mulf %84, %38 : vector<32x32xf32>
    %86 = vector.extract_strided_slice %85 {offsets = [0, 0], sizes = [16, 32], strides = [1, 1]} : vector<32x32xf32> to vector<16x32xf32>
    %87 = vector.extract_strided_slice %85 {offsets = [16, 0], sizes = [16, 32], strides = [1, 1]} : vector<32x32xf32> to vector<16x32xf32>
    %88 = arith.addf %86, %87 : vector<16x32xf32>
    %89 = tpu.concatenate %64, %88 in 0 : vector<16x32xf32>, vector<16x32xf32> -> vector<32x32xf32>
    %c0_27 = arith.constant 0 : index
    %c0_28 = arith.constant 0 : index
    %c0_29 = arith.constant 0 : index
    %90 = vector.load %arg8[%c0_27, %c0_28, %c0_29] : memref<1x32x32xbf16, #tpu.memory_space<vmem>>, vector<1x32x32xbf16>
    %91 = vector.shape_cast %90 : vector<1x32x32xbf16> to vector<32x32xbf16>
    %92 = arith.truncf %89 : vector<32x32xf32> to vector<32x32xbf16>
    %cst_30 = arith.constant dense<0.000000e+00> : vector<32x32xf32>
    %93 = tpu.matmul %92, %91, %cst_30 {dimension_numbers = #tpu.dot_dimension_numbers<[1], [0], [0], [1], [0, 0, 1, 1], [], []>} : vector<32x32xbf16>, vector<32x32xbf16>, vector<32x32xf32> -> vector<32x32xf32>
    %94 = arith.addf %3, %93 : vector<32x32xf32>
    %c0_31 = arith.constant 0 : index
    %c0_32 = arith.constant 0 : index
    %c0_33 = arith.constant 0 : index
    %95 = vector.load %arg9[%c0_31, %c0_32, %c0_33] : memref<1x1x32xf32, #tpu.memory_space<vmem>>, vector<1x1x32xf32>
    %96 = vector.shape_cast %95 : vector<1x1x32xf32> to vector<1x32xf32>
    %c0_34 = arith.constant 0 : index
    %c0_35 = arith.constant 0 : index
    %c0_36 = arith.constant 0 : index
    %97 = vector.load %arg10[%c0_34, %c0_35, %c0_36] : memref<1x1x32xf32, #tpu.memory_space<vmem>>, vector<1x1x32xf32>
    %98 = vector.shape_cast %97 : vector<1x1x32xf32> to vector<1x32xf32>
    %cst_37 = arith.constant dense<0.000000e+00> : vector<32xf32>
    %99 = vector.multi_reduction <add>, %94, %cst_37 [1] : vector<32x32xf32> to vector<32xf32>
    %100 = vector.shape_cast %99 : vector<32xf32> to vector<32x1xf32>
    %cst_38 = arith.constant 3.200000e+01 : f32
    %101 = vector.broadcast %cst_38 : f32 to vector<32x1xf32>
    %102 = arith.divf %100, %101 : vector<32x1xf32>
    %103 = arith.mulf %94, %94 : vector<32x32xf32>
    %cst_39 = arith.constant dense<0.000000e+00> : vector<32xf32>
    %104 = vector.multi_reduction <add>, %103, %cst_39 [1] : vector<32x32xf32> to vector<32xf32>
    %105 = vector.shape_cast %104 : vector<32xf32> to vector<32x1xf32>
    %cst_40 = arith.constant 3.200000e+01 : f32
    %106 = vector.broadcast %cst_40 : f32 to vector<32x1xf32>
    %107 = arith.divf %105, %106 : vector<32x1xf32>
    %108 = arith.mulf %102, %102 : vector<32x1xf32>
    %109 = arith.subf %107, %108 : vector<32x1xf32>
    %110 = vector.broadcast %102 : vector<32x1xf32> to vector<32x32xf32>
    %111 = arith.subf %94, %110 : vector<32x32xf32>
    %cst_41 = arith.constant 9.99999974E-6 : f32
    %112 = vector.broadcast %cst_41 : f32 to vector<32x1xf32>
    %113 = arith.addf %109, %112 : vector<32x1xf32>
    %114 = math.rsqrt %113 : vector<32x1xf32>
    %115 = vector.broadcast %114 : vector<32x1xf32> to vector<32x32xf32>
    %116 = arith.mulf %111, %115 : vector<32x32xf32>
    %117 = vector.broadcast %96 : vector<1x32xf32> to vector<32x32xf32>
    %118 = arith.mulf %116, %117 : vector<32x32xf32>
    %119 = vector.broadcast %98 : vector<1x32xf32> to vector<32x32xf32>
    %120 = arith.addf %118, %119 : vector<32x32xf32>
    %c0_42 = arith.constant 0 : index
    %c0_43 = arith.constant 0 : index
    %c0_44 = arith.constant 0 : index
    %121 = vector.load %arg11[%c0_42, %c0_43, %c0_44] : memref<1x32x128xbf16, #tpu.memory_space<vmem>>, vector<1x32x128xbf16>
    %122 = vector.shape_cast %121 : vector<1x32x128xbf16> to vector<32x128xbf16>
    %123 = arith.truncf %120 : vector<32x32xf32> to vector<32x32xbf16>
    %cst_45 = arith.constant dense<0.000000e+00> : vector<32x128xf32>
    %124 = tpu.matmul %123, %122, %cst_45 {dimension_numbers = #tpu.dot_dimension_numbers<[1], [0], [0], [1], [0, 0, 1, 1], [], []>} : vector<32x32xbf16>, vector<32x128xbf16>, vector<32x128xf32> -> vector<32x128xf32>
    %c0_46 = arith.constant 0 : index
    %c0_47 = arith.constant 0 : index
    %c0_48 = arith.constant 0 : index
    %125 = vector.load %arg12[%c0_46, %c0_47, %c0_48] : memref<1x1x128xf32, #tpu.memory_space<vmem>>, vector<1x1x128xf32>
    %126 = vector.shape_cast %125 : vector<1x1x128xf32> to vector<1x128xf32>
    %127 = vector.broadcast %126 : vector<1x128xf32> to vector<32x128xf32>
    %128 = arith.addf %124, %127 : vector<32x128xf32>
    %129 = arith.mulf %128, %128 : vector<32x128xf32>
    %130 = arith.mulf %128, %129 : vector<32x128xf32>
    %cst_49 = arith.constant 4.471500e-02 : f32
    %131 = vector.broadcast %cst_49 : f32 to vector<32x128xf32>
    %132 = arith.mulf %131, %130 : vector<32x128xf32>
    %133 = arith.addf %128, %132 : vector<32x128xf32>
    %cst_50 = arith.constant 0.797884583 : f32
    %134 = vector.broadcast %cst_50 : f32 to vector<32x128xf32>
    %135 = arith.mulf %134, %133 : vector<32x128xf32>
    %136 = math.tanh %135 : vector<32x128xf32>
    %cst_51 = arith.constant 1.000000e+00 : f32
    %137 = vector.broadcast %cst_51 : f32 to vector<32x128xf32>
    %138 = arith.addf %137, %136 : vector<32x128xf32>
    %cst_52 = arith.constant 5.000000e-01 : f32
    %139 = vector.broadcast %cst_52 : f32 to vector<32x128xf32>
    %140 = arith.mulf %139, %138 : vector<32x128xf32>
    %141 = arith.mulf %128, %140 : vector<32x128xf32>
    %c0_53 = arith.constant 0 : index
    %c0_54 = arith.constant 0 : index
    %c0_55 = arith.constant 0 : index
    %142 = vector.load %arg13[%c0_53, %c0_54, %c0_55] : memref<1x128x32xbf16, #tpu.memory_space<vmem>>, vector<1x128x32xbf16>
    %143 = vector.shape_cast %142 : vector<1x128x32xbf16> to vector<128x32xbf16>
    %144 = arith.truncf %141 : vector<32x128xf32> to vector<32x128xbf16>
    %cst_56 = arith.constant dense<0.000000e+00> : vector<32x32xf32>
    %145 = tpu.matmul %144, %143, %cst_56 {dimension_numbers = #tpu.dot_dimension_numbers<[1], [0], [0], [1], [0, 0, 1, 1], [], []>} : vector<32x128xbf16>, vector<128x32xbf16>, vector<32x32xf32> -> vector<32x32xf32>
    %146 = arith.addf %94, %145 : vector<32x32xf32>
    %c0_57 = arith.constant 0 : index
    %c0_58 = arith.constant 0 : index
    %c0_59 = arith.constant 0 : index
    %147 = vector.load %arg14[%c0_57, %c0_58, %c0_59] : memref<1x1x32xf32, #tpu.memory_space<vmem>>, vector<1x1x32xf32>
    %148 = vector.shape_cast %147 : vector<1x1x32xf32> to vector<1x32xf32>
    %149 = vector.broadcast %148 : vector<1x32xf32> to vector<32x32xf32>
    %150 = arith.addf %146, %149 : vector<32x32xf32>
    %c0_60 = arith.constant 0 : index
    %c0_61 = arith.constant 0 : index
    %151 = vector.load %arg22[%c0_60, %c0_61] : memref<32x32xf32, #tpu.memory_space<vmem>>, vector<32x32xf32>
    tpu.vector_store %arg22[%c0_60, %c0_61], %150 {strides = array<i32>} : memref<32x32xf32, #tpu.memory_space<vmem>>, vector<32x32xf32>,
    %c1_i32 = arith.constant 1 : i32
    %152 = arith.cmpi eq, %arg0, %c1_i32 : i32
    %153 = arith.extui %152 : i1 to i32
    %c0_i32_62 = arith.constant 0 : i32
    %154 = arith.cmpi ne, %153, %c0_i32_62 : i32
    scf.if %154 {
      %c0_63 = arith.constant 0 : index
      %c0_64 = arith.constant 0 : index
      %155 = vector.load %arg15[%c0_63, %c0_64] : memref<1x32xf32, #tpu.memory_space<vmem>>, vector<1x32xf32>
      %c0_65 = arith.constant 0 : index
      %c0_66 = arith.constant 0 : index
      %156 = vector.load %arg16[%c0_65, %c0_66] : memref<1x32xf32, #tpu.memory_space<vmem>>, vector<1x32xf32>
      %cst_67 = arith.constant dense<0.000000e+00> : vector<32xf32>
      %157 = vector.multi_reduction <add>, %150, %cst_67 [1] : vector<32x32xf32> to vector<32xf32>
      %158 = vector.shape_cast %157 : vector<32xf32> to vector<32x1xf32>
      %cst_68 = arith.constant 3.200000e+01 : f32
      %159 = vector.broadcast %cst_68 : f32 to vector<32x1xf32>
      %160 = arith.divf %158, %159 : vector<32x1xf32>
      %161 = arith.mulf %150, %150 : vector<32x32xf32>
      %cst_69 = arith.constant dense<0.000000e+00> : vector<32xf32>
      %162 = vector.multi_reduction <add>, %161, %cst_69 [1] : vector<32x32xf32> to vector<32xf32>
      %163 = vector.shape_cast %162 : vector<32xf32> to vector<32x1xf32>
      %cst_70 = arith.constant 3.200000e+01 : f32
      %164 = vector.broadcast %cst_70 : f32 to vector<32x1xf32>
      %165 = arith.divf %163, %164 : vector<32x1xf32>
      %166 = arith.mulf %160, %160 : vector<32x1xf32>
      %167 = arith.subf %165, %166 : vector<32x1xf32>
      %168 = vector.broadcast %160 : vector<32x1xf32> to vector<32x32xf32>
      %169 = arith.subf %150, %168 : vector<32x32xf32>
      %cst_71 = arith.constant 9.99999974E-6 : f32
      %170 = vector.broadcast %cst_71 : f32 to vector<32x1xf32>
      %171 = arith.addf %167, %170 : vector<32x1xf32>
      %172 = math.rsqrt %171 : vector<32x1xf32>
      %173 = vector.broadcast %172 : vector<32x1xf32> to vector<32x32xf32>
      %174 = arith.mulf %169, %173 : vector<32x32xf32>
      %175 = vector.broadcast %155 : vector<1x32xf32> to vector<32x32xf32>
      %176 = arith.mulf %174, %175 : vector<32x32xf32>
      %177 = vector.broadcast %156 : vector<1x32xf32> to vector<32x32xf32>
      %178 = arith.addf %176, %177 : vector<32x32xf32>
      %c0_72 = arith.constant 0 : index
      %c0_73 = arith.constant 0 : index
      %179 = vector.load %arg17[%c0_72, %c0_73] : memref<32x128xbf16, #tpu.memory_space<vmem>>, vector<32x128xbf16>
      %180 = arith.truncf %178 : vector<32x32xf32> to vector<32x32xbf16>
      %cst_74 = arith.constant dense<0.000000e+00> : vector<32x128xf32>
      %181 = tpu.matmul %180, %179, %cst_74 {dimension_numbers = #tpu.dot_dimension_numbers<[1], [0], [0], [1], [0, 0, 1, 1], [], []>} : vector<32x32xbf16>, vector<32x128xbf16>, vector<32x128xf32> -> vector<32x128xf32>
      %c0_75 = arith.constant 0 : index
      %c0_76 = arith.constant 0 : index
      %182 = vector.load %arg18[%c0_75, %c0_76] : memref<1x128xf32, #tpu.memory_space<vmem>>, vector<1x128xf32>
      %183 = vector.broadcast %182 : vector<1x128xf32> to vector<32x128xf32>
      %184 = arith.addf %181, %183 : vector<32x128xf32>
      %185 = math.tanh %184 : vector<32x128xf32>
      %c0_77 = arith.constant 0 : index
      %c0_78 = arith.constant 0 : index
      %186 = vector.load %arg21[%c0_77, %c0_78] : memref<32x128xf32, #tpu.memory_space<vmem>>, vector<32x128xf32>
      tpu.vector_store %arg21[%c0_77, %c0_78], %185 {strides = array<i32>} : memref<32x128xf32, #tpu.memory_space<vmem>>, vector<32x128xf32>,
    } else {
    }
    return
  }
  func.func @transform_0(%arg0: i32) -> (i32, i32) {
    %c0_i32 = arith.constant 0 : i32
    %c0_i32_0 = arith.constant 0 : i32
    %c0_i32_1 = arith.constant 0 : i32
    return %c0_i32, %c0_i32_0 : i32, i32
  }
  func.func @transform_1(%arg0: i32) -> (i32, i32) {
    %c0_i32 = arith.constant 0 : i32
    %c0_i32_0 = arith.constant 0 : i32
    %c0_i32_1 = arith.constant 0 : i32
    return %c0_i32, %c0_i32_0 : i32, i32
  }
  func.func @transform_2(%arg0: i32) -> (i32, i32) {
    %c0_i32 = arith.constant 0 : i32
    %c0_i32_0 = arith.constant 0 : i32
    %c0_i32_1 = arith.constant 0 : i32
    return %c0_i32, %c0_i32_0 : i32, i32
  }
  func.func @transform_3(%arg0: i32) -> (i32, i32) {
    %c0_i32 = arith.constant 0 : i32
    %c0_i32_0 = arith.constant 0 : i32
    %c0_i32_1 = arith.constant 0 : i32
    return %c0_i32, %c0_i32_0 : i32, i32
  }
  func.func @transform_4(%arg0: i32) -> (i32, i32, i32) {
    %c0_i32 = arith.constant 0 : i32
    %c0_i32_0 = arith.constant 0 : i32
    %c0_i32_1 = arith.constant 0 : i32
    return %arg0, %c0_i32, %c0_i32_0 : i32, i32, i32
  }
  func.func @transform_5(%arg0: i32) -> (i32, i32, i32) {
    %c0_i32 = arith.constant 0 : i32
    %c0_i32_0 = arith.constant 0 : i32
    %c0_i32_1 = arith.constant 0 : i32
    return %arg0, %c0_i32, %c0_i32_0 : i32, i32, i32
  }
  func.func @transform_6(%arg0: i32) -> (i32, i32, i32) {
    %c0_i32 = arith.constant 0 : i32
    %c0_i32_0 = arith.constant 0 : i32
    %c0_i32_1 = arith.constant 0 : i32
    return %arg0, %c0_i32, %c0_i32_0 : i32, i32, i32
  }
  func.func @transform_7(%arg0: i32) -> (i32, i32, i32) {
    %c0_i32 = arith.constant 0 : i32
    %c0_i32_0 = arith.constant 0 : i32
    %c0_i32_1 = arith.constant 0 : i32
    return %arg0, %c0_i32, %c0_i32_0 : i32, i32, i32
  }
  func.func @transform_8(%arg0: i32) -> (i32, i32, i32) {
    %c0_i32 = arith.constant 0 : i32
    %c0_i32_0 = arith.constant 0 : i32
    %c0_i32_1 = arith.constant 0 : i32
    return %arg0, %c0_i32, %c0_i32_0 : i32, i32, i32
  }
  func.func @transform_9(%arg0: i32) -> (i32, i32, i32) {
    %c0_i32 = arith.constant 0 : i32
    %c0_i32_0 = arith.constant 0 : i32
    %c0_i32_1 = arith.constant 0 : i32
    return %arg0, %c0_i32, %c0_i32_0 : i32, i32, i32
  }
  func.func @transform_10(%arg0: i32) -> (i32, i32, i32) {
    %c0_i32 = arith.constant 0 : i32
    %c0_i32_0 = arith.constant 0 : i32
    %c0_i32_1 = arith.constant 0 : i32
    return %arg0, %c0_i32, %c0_i32_0 : i32, i32, i32
  }
  func.func @transform_11(%arg0: i32) -> (i32, i32, i32) {
    %c0_i32 = arith.constant 0 : i32
    %c0_i32_0 = arith.constant 0 : i32
    %c0_i32_1 = arith.constant 0 : i32
    return %arg0, %c0_i32, %c0_i32_0 : i32, i32, i32
  }
  func.func @transform_12(%arg0: i32) -> (i32, i32, i32) {
    %c0_i32 = arith.constant 0 : i32
    %c0_i32_0 = arith.constant 0 : i32
    %c0_i32_1 = arith.constant 0 : i32
    return %arg0, %c0_i32, %c0_i32_0 : i32, i32, i32
  }
  func.func @transform_13(%arg0: i32) -> (i32, i32, i32) {
    %c0_i32 = arith.constant 0 : i32
    %c0_i32_0 = arith.constant 0 : i32
    %c0_i32_1 = arith.constant 0 : i32
    return %arg0, %c0_i32, %c0_i32_0 : i32, i32, i32
  }
  func.func @transform_14(%arg0: i32) -> (i32, i32) {
    %c0_i32 = arith.constant 0 : i32
    %c0_i32_0 = arith.constant 0 : i32
    %c0_i32_1 = arith.constant 0 : i32
    return %c0_i32, %c0_i32_0 : i32, i32
  }
  func.func @transform_15(%arg0: i32) -> (i32, i32) {
    %c0_i32 = arith.constant 0 : i32
    %c0_i32_0 = arith.constant 0 : i32
    %c0_i32_1 = arith.constant 0 : i32
    return %c0_i32, %c0_i32_0 : i32, i32
  }
  func.func @transform_16(%arg0: i32) -> (i32, i32) {
    %c0_i32 = arith.constant 0 : i32
    %c0_i32_0 = arith.constant 0 : i32
    %c0_i32_1 = arith.constant 0 : i32
    return %c0_i32, %c0_i32_0 : i32, i32
  }
  func.func @transform_17(%arg0: i32) -> (i32, i32) {
    %c0_i32 = arith.constant 0 : i32
    %c0_i32_0 = arith.constant 0 : i32
    %c0_i32_1 = arith.constant 0 : i32
    return %c0_i32, %c0_i32_0 : i32, i32
  }
  func.func @transform_18(%arg0: i32) -> (i32, i32) {
    %c0_i32 = arith.constant 0 : i32
    %c0_i32_0 = arith.constant 0 : i32
    %c0_i32_1 = arith.constant 0 : i32
    return %c0_i32, %c0_i32_0 : i32, i32
  }
  func.func @transform_19(%arg0: i32) -> (i32, i32) {
    %c0_i32 = arith.constant 0 : i32
    %c0_i32_0 = arith.constant 0 : i32
    %c0_i32_1 = arith.constant 0 : i32
    return %c0_i32, %c0_i32_0 : i32, i32
  }
  func.func @transform_20(%arg0: i32) -> (i32, i32) {
    %c0_i32 = arith.constant 0 : i32
    %c0_i32_0 = arith.constant 0 : i32
    %c0_i32_1 = arith.constant 0 : i32
    return %c0_i32, %c0_i32_0 : i32, i32
  }
}

</mosaic_0001>

<bundles_post_ra>
// kernel: denoising_transformer_forward.1
= control target key start
LH: loop header
LB: loop body
LE: loop exit
PB: predicated region body
PF: predicated region fallthrough
CT: control target
= control target key end

     0   :  { %s2799_s0 = inlined_call_operand.vmem [shape: f32[32,48], index: 0, kind: input, shape index: {}]   ;;  %s2800_s1 = inlined_call_operand.vmem [shape: bf16[48,32], index: 1, kind: input, shape index: {}]   ;;  %s2801_s2 = inlined_call_operand.vmem [shape: f32[1,32], index: 2, kind: input, shape index: {}]   ;;  %s2802_s3 = inlined_call_operand.vmem [shape: f32[16,32], index: 3, kind: input, shape index: {}]   ;;  %s2803_s4 = inlined_call_operand.vmem [shape: f32[2,1,32], index: 4, kind: input, shape index: {}]   ;;  %s2804_s5 = inlined_call_operand.vmem [shape: f32[2,1,32], index: 5, kind: input, shape index: {}]   ;;  %s2805_s6 = inlined_call_operand.vmem [shape: bf16[2,32,96], index: 6, kind: input, shape index: {}]   ;;  %s2806_s7 = inlined_call_operand.vmem [shape: bf16[2,32,32], index: 7, kind: input, shape index: {}]   ;;  %s2807_s8 = inlined_call_operand.vmem [shape: f32[2,1,32], index: 8, kind: input, shape index: {}]   ;;  %s2808_s9 = inlined_call_operand.vmem [shape: f32[2,1,32], index: 9, kind: input, shape index: {}]   ;;  %s2809_s10 = inlined_call_operand.vmem [shape: bf16[2,32,128], index: 10, kind: input, shape index: {}]   ;;  %s2810_s11 = inlined_call_operand.vmem [shape: f32[2,1,128], index: 11, kind: input, shape index: {}]   ;;  %s2811_s12 = inlined_call_operand.vmem [shape: bf16[2,128,32], index: 12, kind: input, shape index: {}]   ;;  %s2812_s13 = inlined_call_operand.vmem [shape: f32[2,1,32], index: 13, kind: input, shape index: {}]   ;;  %s2813_s14 = inlined_call_operand.vmem [shape: f32[1,32], index: 14, kind: input, shape index: {}]   ;;  %s2814_s15 = inlined_call_operand.vmem [shape: f32[1,32], index: 15, kind: input, shape index: {}]   ;;  %s2815_s16 = inlined_call_operand.vmem [shape: bf16[32,128], index: 16, kind: input, shape index: {}]   ;;  %s2816_s17 = inlined_call_operand.vmem [shape: f32[1,128], index: 17, kind: input, shape index: {}]   ;;  %s2817_s18 = inlined_call_operand.vmem [shape: bf16[32,4], index: 18, kind: input, shape index: {}]   ;;  %s2818_s19 = inlined_call_operand.vmem [shape: bf16[4,32], index: 19, kind: input, shape index: {}]   ;;  %s2819_s20 = inlined_call_operand.vmem [shape: f32[32,128], index: 20, kind: output, shape index: {}]  }
   0x1   :  { %2825 = sst [smem:[#allocation4_spill]] %s2799_s0 }
   0x2   :  { %2826 = sst [smem:[#allocation5_spill]] %s2800_s1  ;;  %s2496_s1 = smov 0  }
   0x3   :  { %2827 = sst [smem:[#allocation6_spill]] %s2801_s2 }
   0x4   :  { %2828 = sst [smem:[#allocation7_spill]] %s2802_s3 }
   0x5   :  { %2829 = sst [smem:[#allocation8_spill]] %s2803_s4 }
   0x6   :  { %2830 = sst [smem:[#allocation9_spill]] %s2805_s6 }
   0x7   :  { %2831 = sst [smem:[#allocation10_spill]] %s2806_s7 }
   0x8   :  { %2832 = sst [smem:[#allocation11_spill]] %s2814_s15 }
   0x9   :  { %2833 = sst [smem:[#allocation12_spill]] %s2816_s17 }
   0xa   :  { %2834 = sst [smem:[#allocation13_spill]] %s2819_s20 }
   0xb LB: > { %2835 = sst [smem:[#allocation3_spill]] %s2387_s1  ;;  %s2502_s22 = sadd.s32 4294967295, %s2387_s1   ;;  %s2387_s1 = sphi %s2496_s1, %s30_s1  }
   0xc   : > { %p2083_p0 = scmp.ge.s32.totalorder %s2387_s1, 1  ;;  %p635_p1 = scmp.lt.s32.totalorder %s2387_s1, 3 }
   0xe   : > { %p636_p2 = pnand %p2083_p0, %p635_p1 }
   0xf   : > { %p721_p3 = scmp.lt.s32.totalorder (!%p636_p2), %s2502_s22, 1  ;;  %s2837_s6 = sld [smem:[#allocation9_spill]] (!%p636_p2) }
  0x10   : > { %639 = sbr.rel (%p636_p2) target bundleno = 2540 (0x9ec), region = 100  ;;  %s2838_s7 = sld [smem:[#allocation10_spill]] (!%p636_p2) }
  0x11   : > { %p2092_p4 = scmp.ne.s32.totalorder (!%p636_p2), %s2502_s22, 0 }
  0x17   : > { %s2508_s23 = scalar_select %p721_p3, %s2502_s22, 1 }
  0x18   : > { %763 = sbr.rel (%p2092_p4) target bundleno = 263 (0x107), region = 104  ;;  %s2839_s25 = sld [smem:[#allocation5_spill]] (!%p2092_p4)  ;;  %vm801_vm0 = vcmask (!%p2092_p4), 392192   ;;  %vm863_vm1 = vcmask (!%p2092_p4), 261120  }
  0x19   : > { %s2145_s4 = sshll.u32 %s2508_s23, 4  ;;  %s742_s26 = scalar_lea.vmem %s2808_s9, %s2508_s23 }
  0x1a   : > { %s2526_s24 = scalar_lea.vmem %s2837_s6, %s2145_s4  ;;  %s2531_s17 = scalar_lea.vmem %s2838_s7, %s2145_s4 }
  0x1b   : > { %s2540_s15 = scalar_lea.vmem %s2809_s10, %s2145_s4  ;;  %s750_s1 = scalar_lea.vmem %s2810_s11, %s2508_s23 }
  0x1c   : > { %s2148_s21 = sshll.u32 %s2508_s23, 6  ;;  %s2840_s30 = sld [smem:[#allocation4_spill]] (!%p2092_p4) }
  0x1d   : > { %s2550_s20 = scalar_lea.vmem %s2811_s12, %s2148_s21  ;;  %s2841_s21 = sld [smem:[#allocation6_spill]] (!%p2092_p4) }
  0x1e   : > { %v2296_v0 = vld [vmem:[%s2839_s25] sm:$0xff] (!%p2092_p4)   ;;  %v2297_v1 = vld [vmem:[%s2839_s25 + $0x8] sm:$0xff] (!%p2092_p4)   ;;  %v2298_v4 = vld [vmem:[%s2839_s25 + $0x10] sm:$0xff] (!%p2092_p4)   ;;  %s2842_s2 = sld [smem:[#allocation7_spill]] (!%p2092_p4) }
  0x1f   : > { %2194 = vmatprep.subr.bf16.mxu0 %v2296_v0 }
  0x20   : > { %2195 = vmatpush3.bf16.msra.mxu0 %v2296_v0 }
  0x21   : > { %2196 = vmatprep.subr.bf16.mxu0 %v2297_v1 }
  0x22   : > { %v764_v2 = vld [vmem:[%s2840_s30] sm:$0xff]  ;;  %v765_v3 = vld [vmem:[%s2840_s30 + $0x8] sm:$0xff]  ;;  %v766_v6 = vld [vmem:[%s2840_s30 + $0x10] sm:$0xff] }
  0x23   : > { %v774_v5 = vpack.c.bf16 %v765_v3, %v764_v2  ;;  %v767_v7 = vld [vmem:[%s2840_s30 + $0x18] sm:$0xff]  ;;  %v2093_v9 = vld [vmem:[%s2841_s21] ss:$0 sm:$0xff] }
  0x24   : > { %2197 = vmatpush3.bf16.msra.mxu0 %v2297_v1  ;;  %v775_v8 = vpack.c.bf16 %v767_v7, %v766_v6  ;;  %v857_v11 = vld [vmem:[%s2842_s2] sm:$0xff]  ;;  %v858_v16 = vld [vmem:[%s2842_s2 + $0x8] sm:$0xff] }
  0x25   : > { %2200 = vmatprep.mubr.msk.bf16.mxu0 %vm801_vm0, %v774_v5  ;;  %2198 = vmatprep.subr.bf16.mxu0 %v2298_v4 }
  0x28   : > { %2199 = vmatpush3.bf16.msra.mxu0 %v2298_v4 }
  0x2b   : > { %2201 = vmatmul.mubr.msk.bf16.vlgmr.msra.gmra.mrb[0].mxu0 %vm801_vm0, %v775_v8 }
  0xfe   : > { %v2202_v10 = vpop.f32.mrb[0].mxu0 }
  0xff   : > { %v851_v12 = vadd.f32 %v2202_v10, %v2093_v9  ;;  %v842_v13 = vpop.f32.mrb[1].mxu0 }
 0x100   : > { %v843_v14 = vadd.f32 %v2093_v9, %v842_v13  ;;  %v2203_v15 = vpop.f32.mrb[2].mxu0 }
 0x101   : > { %v861_v17 = vadd.f32 %v857_v11, %v851_v12  ;;  %v854_v18 = vadd.f32 %v2203_v15, %v2093_v9  ;;  %v845_v19 = vpop.f32.mrb[3].mxu0 }
 0x102   : > { %v859_v20 = vadd.f32 %v857_v11, %v843_v14  ;;  %v846_v21 = vadd.f32 %v2093_v9, %v845_v19 }
 0x103   : > { %866 = vst.msk [vmem:[#allocation2 + $0x10] sm:$0xff] %vm863_vm1, %v861_v17  ;;  %v862_v22 = vadd.f32 %v858_v16, %v854_v18 }
 0x104   : > { %864 = vst.msk [vmem:[#allocation2] sm:$0xff] %vm863_vm1, %v859_v20  ;;  %v860_v23 = vadd.f32 %v858_v16, %v846_v21 }
 0x105   : > { %867 = vst.msk [vmem:[#allocation2 + $0x18] sm:$0xff] %vm863_vm1, %v862_v22 }
 0x106   : > { %865 = vst.msk [vmem:[#allocation2 + $0x8] sm:$0xff] %vm863_vm1, %v860_v23 }
 0x107 PF: > { %vm874_vm2 = vcmask 261120   ;;  %v2299_v40 = vld [vmem:[%s2526_s24] sm:$0xff]   ;;  %v2300_v41 = vld [vmem:[%s2526_s24 + $0x8] sm:$0xff]   ;;  %s2843_s29 = sld [smem:[#allocation8_spill]]  ;;  %s2845_s3 = scalar_lea.vmem %s2804_s5, %s2508_s23  ;;  %vm1160_vm3 = vcmask 1041408   ;;  %vm1153_vm4 = vcmask 31744  }
 0x108   : > { %2204 = vmatprep.subr.bf16.mxu0 %v2299_v40  ;;  %v2100_v12 = vld [vmem:[%s2845_s3] ss:$0 sm:$0xff]  ;;  %s2389_s27 = smov 96   ;;  %s2846_s21 = scalar_lea.vmem %s2807_s8, %s2508_s23 }
 0x109   : > { %2205 = vmatpush3.bf16.msra.mxu0 %v2299_v40  ;;  %s2847_s4 = scalar_lea.vmem %s2812_s13, %s2508_s23  ;;  %p2135_p5 = scmp.ne.s32.totalorder %s2502_s22, 1 }
 0x10a   : > { %v2587_v24 = vld [vmem:[#allocation2 + $0x10] sm:$0xff]  ;;  %2206 = vmatprep.subr.bf16.mxu0 %v2300_v41  ;;  %s2849_s7 = sld [smem:[#allocation12_spill]] (!%p2135_p5) }
 0x10b   : > { %v2589_v25 = vld [vmem:[#allocation2] sm:$0xff]  ;;  %v881_v27 = vsel %vm874_vm2, %v2587_v24, 0.0  ;;  %v894_v33 = vmul.f32 %v2587_v24, %v2587_v24 }
 0x10c   : > { %v2591_v26 = vld [vmem:[#allocation2 + $0x18] sm:$0xff]  ;;  %v875_v28 = vsel %vm874_vm2, %v2589_v25, 0.0  ;;  %v892_v30 = vmul.f32 %v2589_v25, %v2589_v25  ;;  %882 = vadd.xlane.f32.xlu1 %v881_v27 }
 0x10d   : > { %v2597_v29 = vld [vmem:[#allocation2 + $0x8] sm:$0xff]  ;;  %876 = vadd.xlane.f32.xlu0 %v875_v28  ;;  %v895_v32 = vmul.f32 %v2591_v26, %v2591_v26  ;;  %v884_v34 = vsel %vm874_vm2, %v2591_v26, 0.0  ;;  %v902_v39 = vsel %vm874_vm2, %v894_v33, 0.0  ;;  %2207 = vmatpush3.bf16.msra.mxu0 %v2300_v41  ;;  %s2844_s6 = scalar_lea.vmem %s2843_s29, %s2508_s23  ;;  %s2390_s29 = smov 64  }
 0x10e   : > { %v893_v31 = vmul.f32 %v2597_v29, %v2597_v29  ;;  %v878_v35 = vsel %vm874_vm2, %v2597_v29, 0.0  ;;  %v896_v37 = vsel %vm874_vm2, %v892_v30, 0.0  ;;  %v2099_v9 = vld [vmem:[%s2844_s6] ss:$0 sm:$0xff] }
 0x10f   : > { %v905_v38 = vsel %vm874_vm2, %v895_v32, 0.0 }
 0x110   : > { %v899_v36 = vsel %vm874_vm2, %v893_v31, 0.0  ;;  %885 = vadd.xlane.f32.xlu1 %v884_v34  ;;  %v2301_v34 = vld [vmem:[%s2817_s18] sm:$0xff]  }
 0x111   : > { %879 = vadd.xlane.f32.xlu0 %v878_v35  ;;  %2212 = vmatprep.subr.bf16.mxu0 %v2301_v34  ;;  %v2302_v35 = vld [vmem:[%s2817_s18 + $0x8] sm:$0xff]  }
 0x112   : > { %2226 = vmatprep.subr.bf16.mxu1 %v2301_v34 }
 0x113   : > { %2227 = vmatpush3.bf16.msra.mxu1 %v2301_v34 }
 0x114   : > { %900 = vadd.xlane.f32.xlu1 %v899_v36  ;;  %2228 = vmatprep.subr.bf16.mxu1 %v2302_v35 }
 0x115   : > { %897 = vadd.xlane.f32.xlu0 %v896_v37 }
 0x117   : > { %2229 = vmatpush3.bf16.msra.mxu1 %v2302_v35 }
 0x118   : > { %906 = vadd.xlane.f32.xlu1 %v905_v38 }
 0x119   : > { %903 = vadd.xlane.f32.xlu0 %v902_v39 }
 0x199   : > { %v883_v42 = vpop.xlane.xlu1 %882 }
 0x19a   : > { %v877_v43 = vpop.xlane.xlu0 %876  ;;  %v890_v48 = vmul.f32 0.03125, %v883_v42 }
 0x19b   : > { %v888_v46 = vmul.f32 0.03125, %v877_v43 }
 0x19c   : > { %v914_v58 = vmul.f32 %v890_v48, %v890_v48  ;;  %v922_v17 = vsub.f32 %v2587_v24, %v890_v48 }
 0x19d   : > { %v886_v44 = vpop.xlane.xlu1 %885  ;;  %v912_v52 = vmul.f32 %v888_v46, %v888_v46  ;;  %v920_v8 = vsub.f32 %v2589_v25, %v888_v46 }
 0x19e   : > { %v880_v45 = vpop.xlane.xlu0 %879  ;;  %v891_v49 = vmul.f32 0.03125, %v886_v44 }
 0x19f   : > { %v889_v47 = vmul.f32 0.03125, %v880_v45 }
 0x1a0   : > { %v915_v59 = vmul.f32 %v891_v49, %v891_v49  ;;  %v923_v14 = vsub.f32 %v2591_v26, %v891_v49 }
 0x1a1   : > { %v901_v50 = vpop.xlane.xlu1 %900  ;;  %v913_v53 = vmul.f32 %v889_v47, %v889_v47  ;;  %v921_v6 = vsub.f32 %v2597_v29, %v889_v47 }
 0x1a2   : > { %v898_v51 = vpop.xlane.xlu0 %897  ;;  %v909_v54 = vmul.f32 0.03125, %v901_v50 }
 0x1a3   : > { %v908_v55 = vmul.f32 0.03125, %v898_v51 }
 0x1a4   : > { %v917_v56 = vsub.f32 %v909_v54, %v913_v53 }
 0x1a5   : > { %v916_v57 = vsub.f32 %v908_v55, %v912_v52  ;;  %v907_v60 = vpop.xlane.xlu1 %906 }
 0x1a6   : > { %v904_v61 = vpop.xlane.xlu0 %903  ;;  %v925_v62 = vadd.f32 1e-05, %v917_v56  ;;  %v911_v0 = vmul.f32 0.03125, %v907_v60  ;;  %v1037_v60 = vld [vmem:[%s2818_s19] sm:$0x3] }
 0x1a7   : > { %v924_v63 = vadd.f32 1e-05, %v916_v57  ;;  %v910_v1 = vmul.f32 0.03125, %v904_v61  ;;  %v2646_v61 = vsel %vm1160_vm3, %v1037_v60, 0 }
 0x1a8   : > { %2315 = vrsqrt.f32 %v925_v62  ;;  %v919_v2 = vsub.f32 %v911_v0, %v915_v59 }
 0x1a9   : > { %v918_v3 = vsub.f32 %v910_v1, %v914_v58  ;;  %2317 = vrsqrt.f32 %v924_v63 }
 0x1aa   : > { %v927_v4 = vadd.f32 1e-05, %v919_v2 }
 0x1ab   : > { %v926_v5 = vadd.f32 1e-05, %v918_v3 }
 0x1ac   : > { %2319 = vrsqrt.f32 %v927_v4 }
 0x1ad   : > { %2321 = vrsqrt.f32 %v926_v5 }
 0x1b2   : > { %v2316_v7 = vpop.eup %2315 }
 0x1b3   : > { %v2318_v10 = vpop.eup %2317  ;;  %v933_v11 = vmul.f32 %v2316_v7, %v921_v6 }
 0x1b4   : > { %v932_v13 = vmul.f32 %v2318_v10, %v920_v8 }
 0x1b5   : > { %v943_v15 = vmul.f32 %v2099_v9, %v933_v11 }
 0x1b6   : > { %v2320_v16 = vpop.eup %2319  ;;  %v942_v18 = vmul.f32 %v2099_v9, %v932_v13 }
 0x1b7   : > { %v2322_v19 = vpop.eup %2321  ;;  %v953_v20 = vadd.f32 %v2100_v12, %v943_v15  ;;  %v935_v21 = vmul.f32 %v2320_v16, %v923_v14 }
 0x1b8   : > { %v952_v22 = vadd.f32 %v2100_v12, %v942_v18  ;;  %v934_v23 = vmul.f32 %v2322_v19, %v922_v17 }
 0x1b9   : > { %v945_v27 = vmul.f32 %v2099_v9, %v935_v21 }
 0x1ba   : > { %v960_v28 = vpack.c.bf16 %v953_v20, %v952_v22  ;;  %v944_v30 = vmul.f32 %v2099_v9, %v934_v23 }
 0x1bb   : > { %v955_v31 = vadd.f32 %v2100_v12, %v945_v27 }
 0x1bc   : > { %2208 = vmatprep.mubr.msk.bf16.mxu0 %vm874_vm2, %v960_v28  ;;  %v954_v32 = vadd.f32 %v2100_v12, %v944_v30 }
 0x1be   : > { %v961_v33 = vpack.c.bf16 %v955_v31, %v954_v32 }
 0x1c0   : > { %2209 = vmatmul.mubr.msk.bf16.vlgmr.msra.gmra.mrb[0].mxu0 %vm874_vm2, %v961_v33 }
 0x1c1   : > { %2213 = vmatpush3.bf16.msra.mxu0 %v2301_v34 }
 0x1c2   : > { %2214 = vmatprep.subr.bf16.mxu0 %v2302_v35 }
 0x1c5   : > { %2215 = vmatpush3.bf16.msra.mxu0 %v2302_v35 }
 0x1c6   : > { %2284 = vmatprep.subr.msk.bf16.mxu0 %vm1160_vm3, %v1037_v60 }
 0x293   : > { %v2210_v36 = vpop.f32.mrb[0].mxu0 }
 0x294   : > { %1046 = vrot.lane.b32.xlu1 %v2210_v36, %s2389_s27  ;;  %v1014_v37 = vpop.f32.mrb[1].mxu0  ;;  %v1031_v41 = vmul.f32 0.35355338, %v2210_v36 }
 0x295   : > { %1042 = vrot.lane.b32.xlu0 %v1014_v37, %s2389_s27  ;;  %v2211_v38 = vpop.f32.mrb[2].mxu0  ;;  %v1029_v43 = vmul.f32 0.35355338, %v1014_v37 }
 0x296   : > { %v1017_v39 = vpop.f32.mrb[3].mxu0  ;;  %v1032_v44 = vmul.f32 0.35355338, %v2211_v38 }
 0x297   : > { %v1030_v45 = vmul.f32 0.35355338, %v1017_v39 }
 0x298   : > { %1044 = vrot.lane.b32.xlu1 %v1017_v39, %s2389_s27 }
 0x299   : > { %1213 = vrot.lane.b32.xlu0 %v1014_v37, %s2390_s29 }
 0x29c   : > { %1048 = vrot.lane.b32.xlu1 %v2211_v38, %s2389_s27 }
 0x29d   : > { %1217 = vrot.lane.b32.xlu0 %v2210_v36, %s2390_s29 }
 0x2a0   : > { %1215 = vrot.lane.b32.xlu1 %v1017_v39, %s2390_s29 }
 0x2a4   : > { %1219 = vrot.lane.b32.xlu1 %v2211_v38, %s2390_s29 }
 0x306   : > { %v1047_v40 = vpop.permute.xlu1 %1046 }
 0x307   : > { %v1043_v42 = vpop.permute.xlu0 %1042  ;;  %v1056_v53 = vmul.f32 %v1047_v40, %v1029_v43  ;;  %v1233_v55 = vmul.f32 %v1047_v40, %v1031_v41 }
 0x308   : > { %v1054_v47 = vmul.f32 %v1043_v42, %v1029_v43  ;;  %v1231_v48 = vmul.f32 %v1043_v42, %v1031_v41 }
 0x30a   : > { %v1045_v46 = vpop.permute.xlu1 %1044 }
 0x30b   : > { %v1055_v49 = vmul.f32 %v1045_v46, %v1030_v45  ;;  %v1232_v50 = vmul.f32 %v1045_v46, %v1032_v44 }
 0x30d   : > { %v1058_v51 = vpack.c.bf16 %v1055_v49, %v1054_v47  ;;  %v1235_v52 = vpack.c.bf16 %v1232_v50, %v1231_v48 }
 0x30e   : > { %v1049_v54 = vpop.permute.xlu1 %1048 }
 0x30f   : > { %v1057_v56 = vmul.f32 %v1049_v54, %v1030_v45  ;;  %v1234_v57 = vmul.f32 %v1049_v54, %v1032_v44  ;;  %2216 = vmatprep.mubr.msk.bf16.mxu0 %vm874_vm2, %v1058_v51  ;;  %2230 = vmatprep.mubr.msk.bf16.mxu1 %vm874_vm2, %v1235_v52 }
 0x311   : > { %v1059_v58 = vpack.c.bf16 %v1057_v56, %v1056_v53  ;;  %v1236_v59 = vpack.c.bf16 %v1234_v57, %v1233_v55 }
 0x313   : > { %2217 = vmatmul.mubr.msk.bf16.vlgmr.msra.gmra.mrb[4].mxu0 %vm874_vm2, %v1059_v58  ;;  %2231 = vmatmul.mubr.msk.bf16.vlgmr.msra.gmra.mrb[0].mxu1 %vm874_vm2, %v1236_v59  ;;  %v2303_v58 = vld [vmem:[%s2531_s17] sm:$0xff]   ;;  %v2304_v59 = vld [vmem:[%s2531_s17 + $0x8] sm:$0xff]   ;;  %s2848_s17 = sld [smem:[#allocation11_spill]] (!%p2135_p5) }
 0x314   : > { %2221 = vmatpush3.bf16.msra.mxu0 %v2646_v61  ;;  %2240 = vmatprep.subr.bf16.mxu1 %v2303_v58 }
 0x315   : > { %2285 = vmatprep.subr.msk.bf16.mxu0 %vm1160_vm3, %v1037_v60  ;;  %2241 = vmatpush3.bf16.msra.mxu1 %v2303_v58  ;;  %v1214_v60 = vpop.permute.xlu0 %1213 }
 0x316   : > { %2242 = vmatprep.subr.bf16.mxu1 %v2304_v59 }
 0x319   : > { %2243 = vmatpush3.bf16.msra.mxu1 %v2304_v59 }
 0x3e6   : > { %v2218_v62 = vpop.f32.mrb[4].mxu0  ;;  %v2232_v63 = vpop.f32.mrb[0].mxu1 }
 0x3e7   : > { %v1112_v0 = vpop.f32.mrb[5].mxu0  ;;  %v1277_v1 = vpop.f32.mrb[1].mxu1 }
 0x3e8   : > { %v1127_v2 = vmax.f32 %v1112_v0, %v2218_v62  ;;  %v1292_v3 = vmax.f32 %v1277_v1, %v2232_v63  ;;  %v2219_v4 = vpop.f32.mrb[6].mxu0  ;;  %v2233_v5 = vpop.f32.mrb[2].mxu1 }
 0x3e9   : > { %v1115_v6 = vpop.f32.mrb[7].mxu0  ;;  %v1280_v7 = vpop.f32.mrb[3].mxu1 }
 0x3ea   : > { %v1129_v8 = vsub.f32 %v1112_v0, %v1127_v2  ;;  %v1131_v9 = vsub.f32 %v2218_v62, %v1127_v2  ;;  %v1294_v10 = vsub.f32 %v1277_v1, %v1292_v3  ;;  %v1296_v11 = vsub.f32 %v2232_v63, %v1292_v3  ;;  %v1216_v62 = vpop.permute.xlu1 %1215  ;;  %v1218_v63 = vpop.permute.xlu0 %1217 }
 0x3eb   : > { %v1128_v12 = vmax.f32 %v1115_v6, %v2219_v4  ;;  %v1293_v13 = vmax.f32 %v1280_v7, %v2233_v5 }
 0x3ec   : > { %v1133_v14 = vmul.f32 1.442695, %v1129_v8  ;;  %v1137_v15 = vmul.f32 1.442695, %v1131_v9  ;;  %v1298_v16 = vmul.f32 1.442695, %v1294_v10 }
 0x3ed   : > { %v1302_v17 = vmul.f32 1.442695, %v1296_v11  ;;  %v1130_v18 = vsub.f32 %v1115_v6, %v1128_v12  ;;  %v1132_v19 = vsub.f32 %v2219_v4, %v1128_v12  ;;  %v1295_v20 = vsub.f32 %v1280_v7, %v1293_v13 }
 0x3ee   : > { %2323 = vpow2.f32 %v1133_v14  ;;  %v1297_v21 = vsub.f32 %v2233_v5, %v1293_v13  ;;  %v1220_v3 = vpop.permute.xlu1 %1219 }
 0x3ef   : > { %2325 = vpow2.f32 %v1137_v15  ;;  %v1135_v22 = vmul.f32 1.442695, %v1130_v18  ;;  %v1139_v23 = vmul.f32 1.442695, %v1132_v19  ;;  %v1300_v27 = vmul.f32 1.442695, %v1295_v20 }
 0x3f0   : > { %2327 = vpow2.f32 %v1298_v16  ;;  %v1304_v28 = vmul.f32 1.442695, %v1297_v21 }
 0x3f1   : > { %2329 = vpow2.f32 %v1302_v17 }
 0x3f2   : > { %2331 = vpow2.f32 %v1135_v22 }
 0x3f3   : > { %2333 = vpow2.f32 %v1139_v23 }
 0x3f4   : > { %2335 = vpow2.f32 %v1300_v27 }
 0x3f5   : > { %2337 = vpow2.f32 %v1304_v28 }
 0x3f8   : > { %v2324_v30 = vpop.eup %2323 }
 0x3f9   : > { %v2326_v31 = vpop.eup %2325 }
 0x3fa   : > { %v2328_v32 = vpop.eup %2327  ;;  %v1141_v33 = vadd.f32 %v2326_v31, %v2324_v30 }
 0x3fb   : > { %v2330_v34 = vpop.eup %2329 }
 0x3fc   : > { %v2332_v35 = vpop.eup %2331  ;;  %2339 = vrcp.f32 %v1141_v33  ;;  %v1306_v36 = vadd.f32 %v2330_v34, %v2328_v32 }
 0x3fd   : > { %v2334_v37 = vpop.eup %2333 }
 0x3fe   : > { %v2336_v38 = vpop.eup %2335  ;;  %2341 = vrcp.f32 %v1306_v36  ;;  %v1142_v39 = vadd.f32 %v2334_v37, %v2332_v35 }
 0x3ff   : > { %v2338_v40 = vpop.eup %2337 }
 0x400   : > { %2343 = vrcp.f32 %v1142_v39  ;;  %v1307_v41 = vadd.f32 %v2338_v40, %v2336_v38 }
 0x402   : > { %2345 = vrcp.f32 %v1307_v41 }
 0x406   : > { %v2340_v42 = vpop.eup %2339 }
 0x407   : > { %v1147_v43 = vmul.f32 %v2340_v42, %v2324_v30  ;;  %v1149_v44 = vmul.f32 %v2340_v42, %v2326_v31  ;;  %v2305_v42 = vld [vmem:[%s2540_s15] sm:$0xff]  }
 0x408   : > { %v2342_v45 = vpop.eup %2341 }
 0x409   : > { %v1312_v46 = vmul.f32 %v2342_v45, %v2328_v32  ;;  %v1314_v47 = vmul.f32 %v2342_v45, %v2330_v34 }
 0x40a   : > { %v2344_v48 = vpop.eup %2343 }
 0x40b   : > { %v1148_v49 = vmul.f32 %v2344_v48, %v2332_v35  ;;  %v1150_v50 = vmul.f32 %v2344_v48, %v2334_v37 }
 0x40c   : > { %v2346_v51 = vpop.eup %2345 }
 0x40d   : > { %v1151_v52 = vpack.c.bf16 %v1148_v49, %v1147_v43  ;;  %v1152_v53 = vpack.c.bf16 %v1150_v50, %v1149_v44  ;;  %v1313_v54 = vmul.f32 %v2346_v51, %v2336_v38  ;;  %v1315_v55 = vmul.f32 %v2346_v51, %v2338_v40  ;;  %v2306_v43 = vld [vmem:[%s2540_s15 + $0x8] sm:$0xff]  }
 0x40f   : > { %2222 = vmatprep.mubr.msk.bf16.mxu0 %vm1153_vm4, %v1151_v52  ;;  %v1316_v56 = vpack.c.bf16 %v1313_v54, %v1312_v46  ;;  %v1317_v57 = vpack.c.bf16 %v1315_v55, %v1314_v47 }
 0x410   : > { %2223 = vmatmul.mubr.msk.bf16.vlgmr.msra.gmra.mrb[8].mxu0 %vm1153_vm4, %v1152_v53 }
 0x411   : > { %2235 = vmatpush3.bf16.msra.mxu0 %v2646_v61  ;;  %2236 = vmatprep.mubr.msk.bf16.mxu0 %vm1153_vm4, %v1316_v56 }
 0x412   : > { %2248 = vmatprep.subr.bf16.mxu0 %v2305_v42 }
 0x418   : > { %2237 = vmatmul.mubr.msk.bf16.vlgmr.msra.gmra.mrb[12].mxu0 %vm1153_vm4, %v1317_v57 }
 0x419   : > { %2249 = vmatpush3.bf16.msra.mxu0 %v2305_v42  ;;  %v2313_v42 = vld [vmem:[%s2550_s20 + $0x30] sm:$0xff]  }
 0x41a   : > { %2250 = vmatprep.subr.bf16.mxu0 %v2306_v43 }
 0x41d   : > { %2251 = vmatpush3.bf16.msra.mxu0 %v2306_v43  ;;  %v2314_v43 = vld [vmem:[%s2550_s20 + $0x38] sm:$0xff]  }
 0x4e3   : > { %v2224_v0 = vpop.f32.mrb[8].mxu0 }
 0x4e4   : > { %v1227_v1 = vmul.f32 %v2224_v0, %v1218_v63  ;;  %v1198_v2 = vpop.f32.mrb[9].mxu0 }
 0x4e5   : > { %v1225_v4 = vmul.f32 %v1214_v60, %v1198_v2  ;;  %v2225_v5 = vpop.f32.mrb[10].mxu0 }
 0x4e6   : > { %v1228_v6 = vmul.f32 %v2225_v5, %v1220_v3  ;;  %v1201_v7 = vpop.f32.mrb[11].mxu0 }
 0x4e7   : > { %v1229_v61 = vadd.f32 %v1227_v1, %v1225_v4  ;;  %v1226_v8 = vmul.f32 %v1216_v62, %v1201_v7 }
 0x4e9   : > { %v1230_v9 = vadd.f32 %v1228_v6, %v1226_v8 }
 0x4eb   : > { %v1383_v10 = vpack.c.bf16 %v1230_v9, %v1229_v61  ;;  %v2238_v11 = vpop.f32.mrb[12].mxu0 }
 0x4ec   : > { %v1375_v12 = vmul.f32 %v2238_v11, %v1218_v63  ;;  %v1358_v13 = vpop.f32.mrb[13].mxu0  ;;  %v2119_v11 = vld [vmem:[%s2846_s21] ss:$0 sm:$0xff] }
 0x4ed   : > { %v1373_v14 = vmul.f32 %v1358_v13, %v1214_v60  ;;  %v2239_v15 = vpop.f32.mrb[14].mxu0  ;;  %2244 = vmatprep.mubr.msk.bf16.mxu1 %vm874_vm2, %v1383_v10 }
 0x4ee   : > { %v1376_v16 = vmul.f32 %v2239_v15, %v1220_v3  ;;  %v1361_v17 = vpop.f32.mrb[15].mxu0 }
 0x4ef   : > { %v1377_v18 = vadd.f32 %v1375_v12, %v1373_v14  ;;  %v1374_v19 = vmul.f32 %v1361_v17, %v1216_v62 }
 0x4f1   : > { %v1378_v20 = vadd.f32 %v1376_v16, %v1374_v19  ;;  %v2120_v19 = vld [vmem:[%s742_s26] ss:$0 sm:$0xff] }
 0x4f3   : > { %v1384_v21 = vpack.c.bf16 %v1378_v20, %v1377_v18 }
 0x4f5   : > { %2245 = vmatmul.mubr.msk.bf16.vlgmr.msra.gmra.mrb[4].mxu1 %vm874_vm2, %v1384_v21 }
 0x5c8   : > { %v2246_v22 = vpop.f32.mrb[4].mxu1 }
 0x5c9   : > { %v2655_v23 = vadd.f32 %v2246_v22, %v2587_v24  ;;  %v1437_v27 = vpop.f32.mrb[5].mxu1 }
 0x5ca   : > { %v2247_v28 = vpop.f32.mrb[6].mxu1  ;;  %v2658_v30 = vadd.f32 %v1437_v27, %v2589_v25 }
 0x5cb   : > { %v1440_v31 = vpop.f32.mrb[7].mxu1  ;;  %v1464_v32 = vsel %vm874_vm2, %v2655_v23, 0.0  ;;  %v2666_v34 = vadd.f32 %v2247_v28, %v2591_v26  ;;  %v1476_v40 = vmul.f32 %v2655_v23, %v2655_v23 }
 0x5cc   : > { %v2663_v33 = vadd.f32 %v1440_v31, %v2597_v29  ;;  %1465 = vadd.xlane.f32.xlu0 %v1464_v32  ;;  %v1458_v25 = vsel %vm874_vm2, %v2658_v30, 0.0  ;;  %v1474_v37 = vmul.f32 %v2658_v30, %v2658_v30 }
 0x5cd   : > { %v1477_v36 = vmul.f32 %v2666_v34, %v2666_v34  ;;  %v1467_v26 = vsel %vm874_vm2, %v2666_v34, 0.0  ;;  %v1484_v41 = vsel %vm874_vm2, %v1476_v40, 0.0  ;;  %v2311_v40 = vld [vmem:[%s2550_s20 + $0x20] sm:$0xff]  }
 0x5ce   : > { %v1461_v24 = vsel %vm874_vm2, %v2663_v33, 0.0  ;;  %v1475_v35 = vmul.f32 %v2663_v33, %v2663_v33  ;;  %v1478_v39 = vsel %vm874_vm2, %v1474_v37, 0.0  ;;  %v2308_v37 = vld [vmem:[%s2550_s20 + $0x8] sm:$0xff]  }
 0x5cf   : > { %1462 = vadd.xlane.f32.xlu1 %v1461_v24  ;;  %v1487_v38 = vsel %vm874_vm2, %v1477_v36, 0.0 }
 0x5d0   : > { %1459 = vadd.xlane.f32.xlu0 %v1458_v25  ;;  %v1481_v29 = vsel %vm874_vm2, %v1475_v35, 0.0 }
 0x5d3   : > { %1482 = vadd.xlane.f32.xlu1 %v1481_v29 }
 0x5d4   : > { %1468 = vadd.xlane.f32.xlu0 %v1467_v26  ;;  %v2307_v26 = vld [vmem:[%s2550_s20] sm:$0xff]  }
 0x5d5   : > { %2256 = vmatprep.subr.bf16.mxu1 %v2307_v26 }
 0x5d6   : > { %2257 = vmatpush3.bf16.msra.mxu1 %v2307_v26 }
 0x5d7   : > { %1488 = vadd.xlane.f32.xlu1 %v1487_v38  ;;  %2258 = vmatprep.subr.bf16.mxu1 %v2308_v37  ;;  %v2309_v38 = vld [vmem:[%s2550_s20 + $0x10] sm:$0xff]  }
 0x5d8   : > { %1479 = vadd.xlane.f32.xlu0 %v1478_v39  ;;  %v2310_v39 = vld [vmem:[%s2550_s20 + $0x18] sm:$0xff]  }
 0x5da   : > { %2259 = vmatpush3.bf16.msra.mxu1 %v2308_v37 }
 0x5db   : > { %2260 = vmatprep.subr.bf16.mxu1 %v2309_v38 }
 0x5dc   : > { %1485 = vadd.xlane.f32.xlu0 %v1484_v41  ;;  %v2312_v41 = vld [vmem:[%s2550_s20 + $0x28] sm:$0xff]  }
 0x5de   : > { %2261 = vmatpush3.bf16.msra.mxu1 %v2309_v38 }
 0x5df   : > { %2262 = vmatprep.subr.bf16.mxu1 %v2310_v39 }
 0x5e2   : > { %2263 = vmatpush3.bf16.msra.mxu1 %v2310_v39 }
 0x5e3   : > { %2264 = vmatprep.subr.bf16.mxu1 %v2311_v40 }
 0x5e6   : > { %2265 = vmatpush3.bf16.msra.mxu1 %v2311_v40 }
 0x5e7   : > { %2266 = vmatprep.subr.bf16.mxu1 %v2312_v41 }
 0x5ea   : > { %2267 = vmatpush3.bf16.msra.mxu1 %v2312_v41 }
 0x5eb   : > { %2268 = vmatprep.subr.bf16.mxu1 %v2313_v42 }
 0x5ee   : > { %2269 = vmatpush3.bf16.msra.mxu1 %v2313_v42 }
 0x5ef   : > { %2270 = vmatprep.subr.bf16.mxu1 %v2314_v43 }
 0x5f2   : > { %2271 = vmatpush3.bf16.msra.mxu1 %v2314_v43 }
 0x659   : > { %v1466_v44 = vpop.xlane.xlu0 %1465 }
 0x65a   : > { %v1472_v60 = vmul.f32 0.03125, %v1466_v44  ;;  %v2121_v44 = vld [vmem:[%s750_s1] ss:$0 sm:$0xff]  ;;  %s2850_s1 = sld [smem:[#allocation13_spill]] (!%p2135_p5) }
 0x65c   : > { %v1463_v45 = vpop.xlane.xlu1 %1462  ;;  %v1496_v4 = vmul.f32 %v1472_v60, %v1472_v60  ;;  %v1504_v20 = vsub.f32 %v2655_v23, %v1472_v60 }
 0x65d   : > { %v1471_v46 = vmul.f32 0.03125, %v1463_v45  ;;  %v1460_v47 = vpop.xlane.xlu0 %1459 }
 0x65e   : > { %v1470_v52 = vmul.f32 0.03125, %v1460_v47 }
 0x65f   : > { %v1495_v49 = vmul.f32 %v1471_v46, %v1471_v46  ;;  %v1503_v9 = vsub.f32 %v2663_v33, %v1471_v46 }
 0x660   : > { %v1483_v48 = vpop.xlane.xlu1 %1482  ;;  %v1494_v62 = vmul.f32 %v1470_v52, %v1470_v52  ;;  %v1502_v13 = vsub.f32 %v2658_v30, %v1470_v52  ;;  %s2851_s20 = smov (!%p2135_p5), %s2850_s1 }
 0x661   : > { %v1491_v50 = vmul.f32 0.03125, %v1483_v48  ;;  %v1469_v51 = vpop.xlane.xlu0 %1468 }
 0x662   : > { %v1473_v53 = vmul.f32 0.03125, %v1469_v51 }
 0x663   : > { %v1499_v54 = vsub.f32 %v1491_v50, %v1495_v49 }
 0x664   : > { %v1497_v55 = vmul.f32 %v1473_v53, %v1473_v53  ;;  %v1489_v56 = vpop.xlane.xlu1 %1488  ;;  %v1505_v14 = vsub.f32 %v2666_v34, %v1473_v53 }
 0x665   : > { %v1507_v57 = vadd.f32 1e-05, %v1499_v54  ;;  %v1493_v58 = vmul.f32 0.03125, %v1489_v56  ;;  %v1480_v59 = vpop.xlane.xlu0 %1479 }
 0x666   : > { %v1490_v63 = vmul.f32 0.03125, %v1480_v59 }
 0x667   : > { %2347 = vrsqrt.f32 %v1507_v57  ;;  %v1501_v0 = vsub.f32 %v1493_v58, %v1497_v55 }
 0x668   : > { %v1498_v1 = vsub.f32 %v1490_v63, %v1494_v62 }
 0x669   : > { %v1509_v2 = vadd.f32 1e-05, %v1501_v0  ;;  %v1486_v3 = vpop.xlane.xlu0 %1485 }
 0x66a   : > { %v1506_v5 = vadd.f32 1e-05, %v1498_v1  ;;  %v1492_v6 = vmul.f32 0.03125, %v1486_v3 }
 0x66b   : > { %2349 = vrsqrt.f32 %v1509_v2 }
 0x66c   : > { %2351 = vrsqrt.f32 %v1506_v5  ;;  %v1500_v7 = vsub.f32 %v1492_v6, %v1496_v4 }
 0x66e   : > { %v1508_v61 = vadd.f32 1e-05, %v1500_v7 }
 0x670   : > { %2353 = vrsqrt.f32 %v1508_v61 }
 0x671   : > { %v2348_v8 = vpop.eup %2347 }
 0x672   : > { %v1515_v10 = vmul.f32 %v2348_v8, %v1503_v9 }
 0x674   : > { %v1525_v18 = vmul.f32 %v2119_v11, %v1515_v10 }
 0x675   : > { %v2350_v12 = vpop.eup %2349 }
 0x676   : > { %v2352_v15 = vpop.eup %2351  ;;  %v1517_v16 = vmul.f32 %v2350_v12, %v1505_v14  ;;  %v1535_v31 = vadd.f32 %v2120_v19, %v1525_v18 }
 0x677   : > { %v1514_v17 = vmul.f32 %v2352_v15, %v1502_v13 }
 0x678   : > { %v1527_v32 = vmul.f32 %v2119_v11, %v1517_v16 }
 0x679   : > { %v1524_v21 = vmul.f32 %v2119_v11, %v1514_v17 }
 0x67a   : > { %v2354_v22 = vpop.eup %2353  ;;  %v1537_v29 = vadd.f32 %v2120_v19, %v1527_v32 }
 0x67b   : > { %v1516_v27 = vmul.f32 %v2354_v22, %v1504_v20  ;;  %v1534_v28 = vadd.f32 %v2120_v19, %v1524_v21 }
 0x67d   : > { %v1542_v24 = vpack.c.bf16 %v1535_v31, %v1534_v28  ;;  %v1526_v35 = vmul.f32 %v2119_v11, %v1516_v27 }
 0x67f   : > { %2252 = vmatprep.mubr.msk.bf16.mxu0 %vm874_vm2, %v1542_v24  ;;  %v1536_v25 = vadd.f32 %v2120_v19, %v1526_v35  ;;  %v2134_v35 = vld [vmem:[%s2847_s4] ss:$0 sm:$0xff] }
 0x681   : > { %v1543_v36 = vpack.c.bf16 %v1537_v29, %v1536_v25 }
 0x683   : > { %2253 = vmatmul.mubr.msk.bf16.vlgmr.msra.gmra.mrb[16].mxu0 %vm874_vm2, %v1543_v36 }
 0x756   : > { %v2254_v45 = vpop.f32.mrb[16].mxu0 }
 0x757   : > { %v1612_v46 = vadd.f32 %v2254_v45, %v2121_v44  ;;  %v1603_v47 = vpop.f32.mrb[17].mxu0 }
 0x758   : > { %v1604_v48 = vadd.f32 %v2121_v44, %v1603_v47  ;;  %v2255_v49 = vpop.f32.mrb[18].mxu0 }
 0x759   : > { %v1620_v50 = vmul.f32 %v1612_v46, %v1612_v46  ;;  %v1615_v51 = vadd.f32 %v2255_v49, %v2121_v44  ;;  %v1606_v52 = vpop.f32.mrb[19].mxu0 }
 0x75a   : > { %v1618_v53 = vmul.f32 %v1604_v48, %v1604_v48  ;;  %v1607_v54 = vadd.f32 %v2121_v44, %v1606_v52  ;;  %v2363_v52 = vld [vmem:[%s2815_s16] sm:$0xff] (!%p2135_p5)  }
 0x75b   : > { %v1624_v55 = vmul.f32 %v1620_v50, %v1612_v46  ;;  %v1621_v56 = vmul.f32 %v1615_v51, %v1615_v51  ;;  %2276 = vmatprep.subr.bf16.mxu0 (!%p2135_p5), %v2363_v52 }
 0x75c   : > { %v1622_v57 = vmul.f32 %v1618_v53, %v1604_v48  ;;  %v1619_v58 = vmul.f32 %v1607_v54, %v1607_v54  ;;  %v2364_v53 = vld [vmem:[%s2815_s16 + $0x8] sm:$0xff] (!%p2135_p5)   ;;  %2277 = vmatpush3.bf16.msra.mxu0 (!%p2135_p5), %v2363_v52 }
 0x75d   : > { %v1628_v59 = vmul.f32 0.044715, %v1624_v55  ;;  %v1625_v60 = vmul.f32 %v1621_v56, %v1615_v51  ;;  %2278 = vmatprep.subr.bf16.mxu0 (!%p2135_p5), %v2364_v53 }
 0x75e   : > { %v1626_v62 = vmul.f32 0.044715, %v1622_v57  ;;  %v1623_v63 = vmul.f32 %v1619_v58, %v1607_v54 }
 0x75f   : > { %v1632_v0 = vadd.f32 %v1628_v59, %v1612_v46  ;;  %v1629_v1 = vmul.f32 0.044715, %v1625_v60 }
 0x760   : > { %v1630_v2 = vadd.f32 %v1626_v62, %v1604_v48  ;;  %v1627_v3 = vmul.f32 0.044715, %v1623_v63  ;;  %2279 = vmatpush3.bf16.msra.mxu0 (!%p2135_p5), %v2364_v53 }
 0x761   : > { %v1636_v4 = vmul.f32 0.7978846, %v1632_v0  ;;  %v1633_v5 = vadd.f32 %v1629_v1, %v1615_v51 }
 0x762   : > { %v1634_v6 = vmul.f32 0.7978846, %v1630_v2  ;;  %v1631_v7 = vadd.f32 %v1627_v3, %v1607_v54 }
 0x763   : > { %2355 = vtanh.f32 %v1636_v4  ;;  %v1637_v61 = vmul.f32 0.7978846, %v1633_v5 }
 0x764   : > { %2357 = vtanh.f32 %v1634_v6  ;;  %v1635_v8 = vmul.f32 0.7978846, %v1631_v7 }
 0x765   : > { %2359 = vtanh.f32 %v1637_v61 }
 0x766   : > { %2361 = vtanh.f32 %v1635_v8 }
 0x76d   : > { %v2356_v9 = vpop.eup %2355 }
 0x76e   : > { %v2358_v10 = vpop.eup %2357  ;;  %v1644_v11 = vadd.f32 1.0, %v2356_v9 }
 0x76f   : > { %v2360_v12 = vpop.eup %2359  ;;  %v1642_v13 = vadd.f32 1.0, %v2358_v10 }
 0x770   : > { %v2362_v14 = vpop.eup %2361  ;;  %v1648_v15 = vmul.f32 0.5, %v1644_v11  ;;  %v1645_v16 = vadd.f32 1.0, %v2360_v12 }
 0x771   : > { %v1643_v17 = vadd.f32 1.0, %v2362_v14  ;;  %v1646_v18 = vmul.f32 0.5, %v1642_v13 }
 0x772   : > { %v1649_v19 = vmul.f32 0.5, %v1645_v16  ;;  %v1652_v21 = vmul.f32 %v1648_v15, %v1612_v46 }
 0x773   : > { %v1647_v20 = vmul.f32 0.5, %v1643_v17  ;;  %v1650_v27 = vmul.f32 %v1646_v18, %v1604_v48 }
 0x774   : > { %v1653_v22 = vmul.f32 %v1649_v19, %v1615_v51 }
 0x775   : > { %v1651_v28 = vmul.f32 %v1647_v20, %v1607_v54 }
 0x776   : > { %v1671_v31 = vpack.c.bf16 %v1653_v22, %v1652_v21  ;;  %v2136_v21 = vld [vmem:[%s2813_s14] ss:$0 sm:$0xff] (!%p2135_p5) }
 0x777   : > { %v1670_v32 = vpack.c.bf16 %v1651_v28, %v1650_v27  ;;  %v2137_v28 = vld [vmem:[%s2848_s17] ss:$0 sm:$0xff] (!%p2135_p5) }
 0x779   : > { %2272 = vmatprep.mubr.bf16.mxu1 %v1670_v32 }
 0x77a   : > { %2273 = vmatmul.mubr.bf16.vlgmr.msra.gmra.mrb[8].mxu1 %v1671_v31 }
 0x84d   : > { %v2274_v24 = vpop.f32.mrb[8].mxu1 }
 0x84e   : > { %v1771_v25 = vadd.f32 %v2274_v24, %v2655_v23  ;;  %v1754_v29 = vpop.f32.mrb[9].mxu1 }
 0x84f   : > { %v1769_v36 = vadd.f32 %v1754_v29, %v2658_v30  ;;  %v2275_v26 = vpop.f32.mrb[10].mxu1  ;;  %1791 = sbr.rel (%p2135_p5) target bundleno = 2540 (0x9ec), region = 108 }
 0x850   : > { %v2724_v37 = vadd.f32 %v2134_v35, %v1771_v25  ;;  %v1772_v38 = vadd.f32 %v2275_v26, %v2666_v34  ;;  %v1757_v39 = vpop.f32.mrb[11].mxu1 }
 0x851   : > { %v2727_v40 = vadd.f32 %v2134_v35, %v1769_v36  ;;  %v1770_v41 = vadd.f32 %v1757_v39, %v2663_v33 }
 0x852   : > { %1786 = vst.msk [vmem:[#allocation2 + $0x10] sm:$0xff] %vm874_vm2, %v2724_v37  ;;  %v2732_v42 = vadd.f32 %v2134_v35, %v1772_v38  ;;  %v1800_v30 = vsel (!%p2135_p5), %vm874_vm2, %v2724_v37, 0.0  ;;  %v1812_v49 = vmul.f32 (!%p2135_p5), %v2724_v37, %v2724_v37 }
 0x853   : > { %1784 = vst.msk [vmem:[#allocation2] sm:$0xff] %vm874_vm2, %v2727_v40  ;;  %v2736_v23 = vadd.f32 %v2134_v35, %v1770_v41  ;;  %v1794_v33 = vsel (!%p2135_p5), %vm874_vm2, %v2727_v40, 0.0  ;;  %1801 = vadd.xlane.f32.xlu1 (!%p2135_p5), %v1800_v30  ;;  %v1810_v45 = vmul.f32 (!%p2135_p5), %v2727_v40, %v2727_v40 }
 0x854   : > { %1787 = vst.msk [vmem:[#allocation2 + $0x18] sm:$0xff] %vm874_vm2, %v2732_v42  ;;  %1795 = vadd.xlane.f32.xlu0 (!%p2135_p5), %v1794_v33  ;;  %v1803_v34 = vsel (!%p2135_p5), %vm874_vm2, %v2732_v42, 0.0  ;;  %v1813_v48 = vmul.f32 (!%p2135_p5), %v2732_v42, %v2732_v42  ;;  %v1820_v51 = vsel (!%p2135_p5), %vm874_vm2, %v1812_v49, 0.0 }
 0x855   : > { %1785 = vst.msk [vmem:[#allocation2 + $0x8] sm:$0xff] %vm874_vm2, %v2736_v23  ;;  %v1797_v43 = vsel (!%p2135_p5), %vm874_vm2, %v2736_v23, 0.0  ;;  %v1811_v44 = vmul.f32 (!%p2135_p5), %v2736_v23, %v2736_v23  ;;  %v1814_v47 = vsel (!%p2135_p5), %vm874_vm2, %v1810_v45, 0.0 }
 0x856   : > { %v1823_v50 = vsel %vm874_vm2, %v1813_v48, 0.0 }
 0x857   : > { %1804 = vadd.xlane.f32.xlu1 %v1803_v34  ;;  %v1817_v46 = vsel %vm874_vm2, %v1811_v44, 0.0 }
 0x858   : > { %1798 = vadd.xlane.f32.xlu0 %v1797_v43 }
 0x85b   : > { %1818 = vadd.xlane.f32.xlu1 %v1817_v46 }
 0x85c   : > { %1815 = vadd.xlane.f32.xlu0 %v1814_v47 }
 0x85f   : > { %1824 = vadd.xlane.f32.xlu1 %v1823_v50 }
 0x860   : > { %1821 = vadd.xlane.f32.xlu0 %v1820_v51 }
 0x8e0   : > { %v1802_v54 = vpop.xlane.xlu1 %1801 }
 0x8e1   : > { %v1796_v55 = vpop.xlane.xlu0 %1795  ;;  %v1808_v60 = vmul.f32 0.03125, %v1802_v54 }
 0x8e2   : > { %v1806_v58 = vmul.f32 0.03125, %v1796_v55 }
 0x8e3   : > { %v1832_v7 = vmul.f32 %v1808_v60, %v1808_v60  ;;  %v1840_v25 = vsub.f32 %v2724_v37, %v1808_v60  ;;  %v2138_v37 = vld [vmem:[%s2849_s7] ss:$0 sm:$0xff] }
 0x8e4   : > { %v1805_v56 = vpop.xlane.xlu1 %1804  ;;  %v1830_v1 = vmul.f32 %v1806_v58, %v1806_v58  ;;  %v1838_v20 = vsub.f32 %v2727_v40, %v1806_v58 }
 0x8e5   : > { %v1799_v57 = vpop.xlane.xlu0 %1798  ;;  %v1809_v62 = vmul.f32 0.03125, %v1805_v56 }
 0x8e6   : > { %v1807_v59 = vmul.f32 0.03125, %v1799_v57 }
 0x8e7   : > { %v1833_v61 = vmul.f32 %v1809_v62, %v1809_v62  ;;  %v1841_v32 = vsub.f32 %v2732_v42, %v1809_v62 }
 0x8e8   : > { %v1819_v63 = vpop.xlane.xlu1 %1818  ;;  %v1831_v2 = vmul.f32 %v1807_v59, %v1807_v59  ;;  %v1839_v18 = vsub.f32 %v2736_v23, %v1807_v59 }
 0x8e9   : > { %v1816_v0 = vpop.xlane.xlu0 %1815  ;;  %v1827_v3 = vmul.f32 0.03125, %v1819_v63 }
 0x8ea   : > { %v1826_v4 = vmul.f32 0.03125, %v1816_v0 }
 0x8eb   : > { %v1835_v5 = vsub.f32 %v1827_v3, %v1831_v2 }
 0x8ec   : > { %v1834_v6 = vsub.f32 %v1826_v4, %v1830_v1  ;;  %v1825_v8 = vpop.xlane.xlu1 %1824 }
 0x8ed   : > { %v1822_v9 = vpop.xlane.xlu0 %1821  ;;  %v1843_v10 = vadd.f32 1e-05, %v1835_v5  ;;  %v1829_v12 = vmul.f32 0.03125, %v1825_v8 }
 0x8ee   : > { %v1842_v11 = vadd.f32 1e-05, %v1834_v6  ;;  %v1828_v13 = vmul.f32 0.03125, %v1822_v9 }
 0x8ef   : > { %2365 = vrsqrt.f32 %v1843_v10  ;;  %v1837_v14 = vsub.f32 %v1829_v12, %v1833_v61 }
 0x8f0   : > { %v1836_v15 = vsub.f32 %v1828_v13, %v1832_v7  ;;  %2367 = vrsqrt.f32 %v1842_v11 }
 0x8f1   : > { %v1845_v16 = vadd.f32 1e-05, %v1837_v14 }
 0x8f2   : > { %v1844_v17 = vadd.f32 1e-05, %v1836_v15 }
 0x8f3   : > { %2369 = vrsqrt.f32 %v1845_v16 }
 0x8f4   : > { %2371 = vrsqrt.f32 %v1844_v17 }
 0x8f9   : > { %v2366_v19 = vpop.eup %2365 }
 0x8fa   : > { %v2368_v22 = vpop.eup %2367  ;;  %v1851_v27 = vmul.f32 %v2366_v19, %v1839_v18 }
 0x8fb   : > { %v1850_v31 = vmul.f32 %v2368_v22, %v1838_v20 }
 0x8fc   : > { %v1861_v24 = vmul.f32 %v2136_v21, %v1851_v27 }
 0x8fd   : > { %v2370_v35 = vpop.eup %2369  ;;  %v1860_v29 = vmul.f32 %v2136_v21, %v1850_v31 }
 0x8fe   : > { %v2372_v36 = vpop.eup %2371  ;;  %v1871_v26 = vadd.f32 %v2137_v28, %v1861_v24  ;;  %v1853_v38 = vmul.f32 %v2370_v35, %v1841_v32 }
 0x8ff   : > { %v1870_v39 = vadd.f32 %v2137_v28, %v1860_v29  ;;  %v1852_v40 = vmul.f32 %v2372_v36, %v1840_v25 }
 0x900   : > { %v1863_v41 = vmul.f32 %v2136_v21, %v1853_v38 }
 0x901   : > { %v1878_v23 = vpack.c.bf16 %v1871_v26, %v1870_v39  ;;  %v1862_v30 = vmul.f32 %v2136_v21, %v1852_v40 }
 0x902   : > { %v1873_v33 = vadd.f32 %v2137_v28, %v1863_v41 }
 0x903   : > { %2280 = vmatprep.mubr.msk.bf16.mxu0 %vm874_vm2, %v1878_v23  ;;  %v1872_v34 = vadd.f32 %v2137_v28, %v1862_v30 }
 0x905   : > { %v1879_v43 = vpack.c.bf16 %v1873_v33, %v1872_v34 }
 0x907   : > { %2281 = vmatmul.mubr.msk.bf16.vlgmr.msra.gmra.mrb[0].mxu0 %vm874_vm2, %v1879_v43 }
 0x9da   : > { %v2282_v42 = vpop.f32.mrb[0].mxu0 }
 0x9db   : > { %v1948_v44 = vadd.f32 %v2282_v42, %v2138_v37  ;;  %v1939_v45 = vpop.f32.mrb[1].mxu0 }
 0x9dc   : > { %v1940_v46 = vadd.f32 %v2138_v37, %v1939_v45  ;;  %v2283_v47 = vpop.f32.mrb[2].mxu0 }
 0x9dd   : > { %2373 = vtanh.f32 %v1948_v44  ;;  %v1951_v48 = vadd.f32 %v2283_v47, %v2138_v37  ;;  %v1942_v49 = vpop.f32.mrb[3].mxu0 }
 0x9de   : > { %2375 = vtanh.f32 %v1940_v46  ;;  %v1943_v50 = vadd.f32 %v2138_v37, %v1942_v49 }
 0x9df   : > { %2377 = vtanh.f32 %v1951_v48 }
 0x9e0   : > { %2379 = vtanh.f32 %v1943_v50 }
 0x9e7   : > { %v2374_v51 = vpop.eup %2373 }
 0x9e8   : > { %v2376_v52 = vpop.eup %2375  ;;  %1960 = vst [vmem:[%s2850_s1 + $0x10] sm:$0xff] %v2374_v51 }
 0x9e9   : > { %v2378_v53 = vpop.eup %2377  ;;  %1958 = vst [vmem:[%s2851_s20] sm:$0xff] %v2376_v52 }
 0x9ea   : > { %v2380_v54 = vpop.eup %2379  ;;  %1961 = vst [vmem:[%s2851_s20 + $0x18] sm:$0xff] %v2378_v53 }
 0x9eb   : > { %1959 = vst [vmem:[%s2851_s20 + $0x8] sm:$0xff] %v2380_v54 }
 0x9ec PF: > { %s2852_s6 = sld [smem:[#allocation3_spill]] }
 0x9f2   : > { %s30_s1 = sadd.s32 1, %s2852_s6  }
 0x9f3   : > { %p27_p6 = scmp.ge.s32.totalorder %s30_s1, 4  }
 0x9f5   :  { %29 = sbr.rel (!%p27_p6) target bundleno = 11 (0xb), region = 161 }

</bundles_post_ra>
